<compile_context>
chip_gen: v7x
topology: tpu7x:2x2x1
jax: 0.10.0
libtpu: 0.0.40
codegen_flags: <defaults>
</compile_context>

<pallas_src>
import jax
import jax.numpy as jnp
from jax.experimental import pallas as pl
from jax.experimental.pallas import tpu as pltpu


# ----------------------------------------------------------------------------
# Pallas kernel: fused Conv3x3 + bias + ReLU + (BN folded) + Conv1x1 + bias +
#                Sigmoid, one image per grid step, transposed (C-major) layout.
# ----------------------------------------------------------------------------
def _spatial_att_kernel(x_ref, w1_ref, b1_ref, w2_ref, b2_ref, out_ref,
                        xflat_ref):
    # x_ref:     (1, C, H, W)   bf16 input image (x ++ pos-embed channels)
    # w1_ref:    (C, 9*Cp)      bf16 im2col 3x3 weights, [cout, tap*Cp + cin]
    # b1_ref:    (C, 1)         f32 conv1 bias
    # w2_ref:    (C, P)         f32 1x1 conv weights with BN scale folded in
    # b2_ref:    (P, 1)         f32 1x1 conv bias with BN shift folded in
    # out_ref:   (1, P, H*Wp)   f32 lane-dense output (Wp = W + 2)
    # xflat_ref: (Cp, FLAT)     bf16 scratch: flattened zero-padded image
    _, C, H, W = x_ref.shape
    Cp, _ = xflat_ref.shape
    _, P, LP = out_ref.shape
    Wp = W + 2

    # --- Zero-pad inside VMEM (avoids a full-tensor jnp.pad HBM round trip).
    xflat_ref[...] = jnp.zeros_like(xflat_ref)
    xv = x_ref[0]                                          # (C, H, W) bf16
    for h in range(H):                                     # static, unrolled
        base = (h + 1) * Wp + 1
        xflat_ref[:C, base:base + W] = xv[:, h, :]

    xflat = xflat_ref[...]                                 # (Cp, FLAT) bf16

    # --- im2col: every 3x3 tap is a *contiguous* lane-offset slice of the
    # flattened padded image, so the patch matrix needs no per-tap reshape.
    taps = []
    for ky in range(3):
        for kx in range(3):
            off = ky * Wp + kx
            taps.append(xflat[:, off:off + LP])            # (Cp, LP)
    patches = jnp.concatenate(taps, axis=0)                # (9*Cp, LP) bf16

    # --- Single MXU matmul, K = 9*Cp (~9x fewer MXU passes than per-tap dots).
    acc = jnp.dot(w1_ref[...], patches,
                  preferred_element_type=jnp.float32)      # (C, LP) f32
    acc = jnp.maximum(acc + b1_ref[...], 0.0)              # bias + ReLU
    # BatchNorm (eval) affine is folded into w2/b2 in the wrapper.

    if P == 1:
        # 1x1 conv with one output channel: VPU multiply + sublane (XLU)
        # reduction instead of a 1-of-256-columns MXU pass.
        y = jnp.sum(acc * w2_ref[...], axis=0, keepdims=True)        # (1, LP)
    else:
        y = jax.lax.dot_general(
            w2_ref[...], acc,
            dimension_numbers=(((0,), (0,)), ((), ())),
            preferred_element_type=jnp.float32)                       # (P, LP)

    y = jax.nn.sigmoid(y + b2_ref[...])
    out_ref[...] = y[None].astype(out_ref.dtype)           # lane-dense store


def spatial_attention_core(x_cat, params):
    """Fused 'core' Sequential on an NCHW tensor via pallas_call."""
    N, C, H, W = x_cat.shape
    P = params["w2"].shape[-1]
    Wp = W + 2
    LP = H * Wp                                    # padded-width flat output
    Cp = ((C + 15) // 16) * 16                     # bf16 sublane-pack aligned
    # flat buffer must cover the furthest tap slice: 2*Wp + 2 + LP
    FLAT = ((2 * Wp + 2 + LP + 127) // 128) * 128

    eps = 1e-5
    scale = params["bn_gamma"] / jnp.sqrt(params["bn_var"] + eps)
    shift = params["bn_beta"] - params["bn_mean"] * scale

    # bf16 weights/activations for the MXU; f32 accumulation in-kernel.
    w1_q = params["w1"].astype(jnp.bfloat16)                       # (3,3,C,C)
    w1t = jnp.transpose(w1_q, (3, 0, 1, 2)).reshape(C, 9, C)       # (co,tap,ci)
    w1t = jnp.pad(w1t, ((0, 0), (0, 0), (0, Cp - C)))
    w1t = w1t.reshape(C, 9 * Cp)                                   # bf16

    b1 = params["b1"].reshape(C, 1).astype(jnp.float32)
    # Fold BatchNorm affine into the 1x1 conv.
    w2f = (scale[:, None] * params["w2"]).astype(jnp.float32)      # (C, P)
    b2f = (shift @ params["w2"] + params["b2"]).reshape(P, 1)
    b2f = b2f.astype(jnp.float32)

    x_bf = x_cat.astype(jnp.bfloat16)

    # grid over N stays "parallel" so v7x's two TensorCores both get work.
    # (On v5e/v6e a single-block whole-batch variant would also be fine: the
    #  per-image VMEM footprint here is only a few tens of KiB, far below even
    #  v7x's 64 MiB.)
    out_flat = pl.pallas_call(
        _spatial_att_kernel,
        out_shape=jax.ShapeDtypeStruct((N, P, LP), jnp.float32),
        grid_spec=pltpu.PrefetchScalarGridSpec(
            num_scalar_prefetch=0,
            grid=(N,),
            in_specs=[
                pl.BlockSpec((1, C, H, W), lambda n: (n, 0, 0, 0)),
                pl.BlockSpec((C, 9 * Cp), lambda n: (0, 0)),
                pl.BlockSpec((C, 1), lambda n: (0, 0)),
                pl.BlockSpec((C, P), lambda n: (0, 0)),
                pl.BlockSpec((P, 1), lambda n: (0, 0)),
            ],
            out_specs=pl.BlockSpec((1, P, LP), lambda n: (n, 0, 0)),
            scratch_shapes=[pltpu.VMEM((Cp, FLAT), jnp.bfloat16)],
        ),
        compiler_params=pltpu.CompilerParams(
            dimension_semantics=("parallel",)),
    )(x_bf, w1t, b1, w2f, b2f)

    # Drop the 2 padded columns per row; reshape to (N, P, H, W) NCHW.
    return out_flat.reshape(N, P, H, Wp)[:, :, :, :W]


# ----------------------------------------------------------------------------
# Module glue (embedding concat / interpolation) in plain JAX — NCHW end-to-end
# ----------------------------------------------------------------------------
def se_engine(x_nchw, pos_emb):
    # TODO(synk): neko_add_embint_se source not provided; assumed semantics:
    # a learnable (se_channel, 16, 16) spatial embedding, resized to the
    # input's HxW and channel-concatenated with x.
    N, C, H, W = x_nchw.shape
    emb = pos_emb
    if emb.shape[-2:] != (H, W):
        emb = jax.image.resize(emb, (emb.shape[0], H, W), method="bilinear")
    emb = jnp.broadcast_to(emb[None], (N,) + emb.shape)
    return jnp.concatenate([x_nchw, emb], axis=1)


def area_interpolate(x_nchw, out_h, out_w):
    # F.interpolate(mode='area') for the integer-ratio downsample case.
    N, C, H, W = x_nchw.shape
    if H % out_h == 0 and W % out_w == 0:
        return x_nchw.reshape(N, C, out_h, H // out_h,
                              out_w, W // out_w).mean(axis=(3, 5))
    # TODO(synk): non-integer-ratio 'area' interpolation not implemented.
    raise NotImplementedError("area interpolate: non-divisible sizes")


def spatial_attention_NG_mk2_forward(inputs, params):
    x = inputs[0]
    d = inputs[-1]
    if x.shape[-1] != d.shape[-1]:
        x = area_interpolate(x, d.shape[-2], d.shape[-1])
    x_cat = se_engine(x, params["pos_emb"])          # (N, C, H, W), C=ifc+se_ch
    return spatial_attention_core(x_cat, params)     # (N, nparts, H, W)


# ----------------------------------------------------------------------------
# Deterministic parameter init (synthetic; no checkpoint load)
# ----------------------------------------------------------------------------
def init_params(key, ifc, se_ch, nparts):
    C = ifc + se_ch
    ks = jax.random.split(key, 8)

    def uni(k, shape, fan_in):
        bound = 1.0 / jnp.sqrt(jnp.float32(fan_in))
        return jax.random.uniform(k, shape, jnp.float32, -bound, bound)

    return dict(
        pos_emb=0.1 * jax.random.normal(ks[0], (se_ch, 16, 16), jnp.float32),
        w1=uni(ks[1], (3, 3, C, C), 9 * C),                 # HWIO
        b1=uni(ks[2], (C,), 9 * C),
        # TODO(synk): BatchNorm2d implemented in eval mode (running stats);
        # training-mode batch statistics would need a cross-batch reduction.
        bn_gamma=jnp.ones((C,), jnp.float32),
        bn_beta=jnp.zeros((C,), jnp.float32),
        bn_mean=0.05 * jax.random.normal(ks[3], (C,), jnp.float32),
        bn_var=1.0 + 0.1 * jax.random.uniform(ks[4], (C,), jnp.float32),
        w2=uni(ks[5], (C, nparts), C),
        b2=uni(ks[6], (nparts,), C),
    )


def _reference_core(x_cat, params):
    """Pure-JAX reference of the fused core (same bf16 input quantization)."""
    eps = 1e-5
    xq = x_cat.astype(jnp.bfloat16)
    wq = params["w1"].astype(jnp.bfloat16)
    y = jax.lax.conv_general_dilated(
        xq, wq, (1, 1), "SAME",
        dimension_numbers=("NCHW", "HWIO", "NCHW"),
        preferred_element_type=jnp.float32)
    y = y + params["b1"][None, :, None, None]
    y = jnp.maximum(y, 0.0)
    scale = params["bn_gamma"] / jnp.sqrt(params["bn_var"] + eps)
    shift = params["bn_beta"] - params["bn_mean"] * scale
    y = y * scale[None, :, None, None] + shift[None, :, None, None]
    y = jnp.einsum("nchw,cp->nphw", y, params["w2"])
    y = y + params["b2"][None, :, None, None]
    return jax.nn.sigmoid(y)


if __name__ == "__main__":
    N, ifc, se_ch, nparts, H, W = 2, 4, 8, 1, 16, 16

    key = jax.random.PRNGKey(0)
    k_x, k_d, k_p = jax.random.split(key, 3)
    x = jax.random.normal(k_x, (N, ifc, H, W), jnp.float32)   # input[0]
    d = jax.random.normal(k_d, (N, 8, H, W), jnp.float32)     # input[-1]
    params = init_params(k_p, ifc, se_ch, nparts)

    out = spatial_attention_NG_mk2_forward([x, d], params)
    out = jax.block_until_ready(out)
    assert out.shape == (N, nparts, H, W), out.shape

    # Verify kernel against a pure-JAX reference of the fused core.
    x_cat = se_engine(x, params["pos_emb"])
    ref = _reference_core(x_cat, params)
    err = float(jnp.max(jnp.abs(out - ref)))
    assert jnp.allclose(out, ref, atol=2e-4, rtol=2e-4), err

    print("KERNEL_OK")
</pallas_src>

<mosaic_0001>
module attributes {stable_mosaic.version = 11 : i64} {
  func.func @_spatial_att_kernel(%arg0: i32, %arg1: memref<1x12x16x16xbf16, #tpu.memory_space<vmem>>, %arg2: memref<12x144xbf16, #tpu.memory_space<vmem>>, %arg3: memref<12x1xf32, #tpu.memory_space<vmem>>, %arg4: memref<12x1xf32, #tpu.memory_space<vmem>>, %arg5: memref<1x1xf32, #tpu.memory_space<vmem>>, %arg6: memref<1x1x288xf32, #tpu.memory_space<vmem>>, %arg7: memref<16x384xbf16, #tpu.memory_space<vmem>>) attributes {dimension_semantics = [#tpu.dimension_semantics<parallel>], iteration_bounds = array<i64: 2>, scalar_prefetch = 0 : i64, scratch_operands = 1 : i64, tpu.core_type = #tpu.core_type<tc>, window_params = [{transform_indices = @transform_0, window_bounds = array<i64: 1, 12, 16, 16>}, {pipeline_mode = #tpu.pipeline_mode<synchronous>, transform_indices = @transform_1, window_bounds = array<i64: 12, 144>}, {pipeline_mode = #tpu.pipeline_mode<synchronous>, transform_indices = @transform_2, window_bounds = array<i64: 12, 1>}, {pipeline_mode = #tpu.pipeline_mode<synchronous>, transform_indices = @transform_3, window_bounds = array<i64: 12, 1>}, {pipeline_mode = #tpu.pipeline_mode<synchronous>, transform_indices = @transform_4, window_bounds = array<i64: 1, 1>}, {transform_indices = @transform_5, window_bounds = array<i64: 1, 1, 288>}]} {
    %cst = arith.constant 0.000000e+00 : bf16
    %0 = vector.broadcast %cst : bf16 to vector<16x384xbf16>
    %c0 = arith.constant 0 : index
    %c0_0 = arith.constant 0 : index
    %1 = vector.load %arg7[%c0, %c0_0] : memref<16x384xbf16, #tpu.memory_space<vmem>>, vector<16x384xbf16>
    tpu.vector_store %arg7[%c0, %c0_0], %0 {strides = array<i32>} : memref<16x384xbf16, #tpu.memory_space<vmem>>, vector<16x384xbf16>,
    %c0_1 = arith.constant 0 : index
    %c0_2 = arith.constant 0 : index
    %c0_3 = arith.constant 0 : index
    %c0_4 = arith.constant 0 : index
    %2 = vector.load %arg1[%c0_1, %c0_2, %c0_3, %c0_4] : memref<1x12x16x16xbf16, #tpu.memory_space<vmem>>, vector<1x12x16x16xbf16>
    %3 = vector.shape_cast %2 : vector<1x12x16x16xbf16> to vector<12x16x16xbf16>
    %4 = vector.extract_strided_slice %3 {offsets = [0, 0, 0], sizes = [12, 1, 16], strides = [1, 1, 1]} : vector<12x16x16xbf16> to vector<12x1x16xbf16>
    %5 = vector.shape_cast %4 : vector<12x1x16xbf16> to vector<12x16xbf16>
    %c0_5 = arith.constant 0 : index
    %c19 = arith.constant 19 : index
    %6 = vector.load %arg7[%c0_5, %c19] : memref<16x384xbf16, #tpu.memory_space<vmem>>, vector<12x16xbf16>
    tpu.vector_store %arg7[%c0_5, %c19], %5 {strides = array<i32>} : memref<16x384xbf16, #tpu.memory_space<vmem>>, vector<12x16xbf16>,
    %7 = vector.extract_strided_slice %3 {offsets = [0, 1, 0], sizes = [12, 1, 16], strides = [1, 1, 1]} : vector<12x16x16xbf16> to vector<12x1x16xbf16>
    %8 = vector.shape_cast %7 : vector<12x1x16xbf16> to vector<12x16xbf16>
    %c0_6 = arith.constant 0 : index
    %c37 = arith.constant 37 : index
    %9 = vector.load %arg7[%c0_6, %c37] : memref<16x384xbf16, #tpu.memory_space<vmem>>, vector<12x16xbf16>
    tpu.vector_store %arg7[%c0_6, %c37], %8 {strides = array<i32>} : memref<16x384xbf16, #tpu.memory_space<vmem>>, vector<12x16xbf16>,
    %10 = vector.extract_strided_slice %3 {offsets = [0, 2, 0], sizes = [12, 1, 16], strides = [1, 1, 1]} : vector<12x16x16xbf16> to vector<12x1x16xbf16>
    %11 = vector.shape_cast %10 : vector<12x1x16xbf16> to vector<12x16xbf16>
    %c0_7 = arith.constant 0 : index
    %c55 = arith.constant 55 : index
    %12 = vector.load %arg7[%c0_7, %c55] : memref<16x384xbf16, #tpu.memory_space<vmem>>, vector<12x16xbf16>
    tpu.vector_store %arg7[%c0_7, %c55], %11 {strides = array<i32>} : memref<16x384xbf16, #tpu.memory_space<vmem>>, vector<12x16xbf16>,
    %13 = vector.extract_strided_slice %3 {offsets = [0, 3, 0], sizes = [12, 1, 16], strides = [1, 1, 1]} : vector<12x16x16xbf16> to vector<12x1x16xbf16>
    %14 = vector.shape_cast %13 : vector<12x1x16xbf16> to vector<12x16xbf16>
    %c0_8 = arith.constant 0 : index
    %c73 = arith.constant 73 : index
    %15 = vector.load %arg7[%c0_8, %c73] : memref<16x384xbf16, #tpu.memory_space<vmem>>, vector<12x16xbf16>
    tpu.vector_store %arg7[%c0_8, %c73], %14 {strides = array<i32>} : memref<16x384xbf16, #tpu.memory_space<vmem>>, vector<12x16xbf16>,
    %16 = vector.extract_strided_slice %3 {offsets = [0, 4, 0], sizes = [12, 1, 16], strides = [1, 1, 1]} : vector<12x16x16xbf16> to vector<12x1x16xbf16>
    %17 = vector.shape_cast %16 : vector<12x1x16xbf16> to vector<12x16xbf16>
    %c0_9 = arith.constant 0 : index
    %c91 = arith.constant 91 : index
    %18 = vector.load %arg7[%c0_9, %c91] : memref<16x384xbf16, #tpu.memory_space<vmem>>, vector<12x16xbf16>
    tpu.vector_store %arg7[%c0_9, %c91], %17 {strides = array<i32>} : memref<16x384xbf16, #tpu.memory_space<vmem>>, vector<12x16xbf16>,
    %19 = vector.extract_strided_slice %3 {offsets = [0, 5, 0], sizes = [12, 1, 16], strides = [1, 1, 1]} : vector<12x16x16xbf16> to vector<12x1x16xbf16>
    %20 = vector.shape_cast %19 : vector<12x1x16xbf16> to vector<12x16xbf16>
    %c0_10 = arith.constant 0 : index
    %c109 = arith.constant 109 : index
    %21 = vector.load %arg7[%c0_10, %c109] : memref<16x384xbf16, #tpu.memory_space<vmem>>, vector<12x16xbf16>
    tpu.vector_store %arg7[%c0_10, %c109], %20 {strides = array<i32>} : memref<16x384xbf16, #tpu.memory_space<vmem>>, vector<12x16xbf16>,
    %22 = vector.extract_strided_slice %3 {offsets = [0, 6, 0], sizes = [12, 1, 16], strides = [1, 1, 1]} : vector<12x16x16xbf16> to vector<12x1x16xbf16>
    %23 = vector.shape_cast %22 : vector<12x1x16xbf16> to vector<12x16xbf16>
    %c0_11 = arith.constant 0 : index
    %c127 = arith.constant 127 : index
    %24 = vector.load %arg7[%c0_11, %c127] : memref<16x384xbf16, #tpu.memory_space<vmem>>, vector<12x16xbf16>
    tpu.vector_store %arg7[%c0_11, %c127], %23 {strides = array<i32>} : memref<16x384xbf16, #tpu.memory_space<vmem>>, vector<12x16xbf16>,
    %25 = vector.extract_strided_slice %3 {offsets = [0, 7, 0], sizes = [12, 1, 16], strides = [1, 1, 1]} : vector<12x16x16xbf16> to vector<12x1x16xbf16>
    %26 = vector.shape_cast %25 : vector<12x1x16xbf16> to vector<12x16xbf16>
    %c0_12 = arith.constant 0 : index
    %c145 = arith.constant 145 : index
    %27 = vector.load %arg7[%c0_12, %c145] : memref<16x384xbf16, #tpu.memory_space<vmem>>, vector<12x16xbf16>
    tpu.vector_store %arg7[%c0_12, %c145], %26 {strides = array<i32>} : memref<16x384xbf16, #tpu.memory_space<vmem>>, vector<12x16xbf16>,
    %28 = vector.extract_strided_slice %3 {offsets = [0, 8, 0], sizes = [12, 1, 16], strides = [1, 1, 1]} : vector<12x16x16xbf16> to vector<12x1x16xbf16>
    %29 = vector.shape_cast %28 : vector<12x1x16xbf16> to vector<12x16xbf16>
    %c0_13 = arith.constant 0 : index
    %c163 = arith.constant 163 : index
    %30 = vector.load %arg7[%c0_13, %c163] : memref<16x384xbf16, #tpu.memory_space<vmem>>, vector<12x16xbf16>
    tpu.vector_store %arg7[%c0_13, %c163], %29 {strides = array<i32>} : memref<16x384xbf16, #tpu.memory_space<vmem>>, vector<12x16xbf16>,
    %31 = vector.extract_strided_slice %3 {offsets = [0, 9, 0], sizes = [12, 1, 16], strides = [1, 1, 1]} : vector<12x16x16xbf16> to vector<12x1x16xbf16>
    %32 = vector.shape_cast %31 : vector<12x1x16xbf16> to vector<12x16xbf16>
    %c0_14 = arith.constant 0 : index
    %c181 = arith.constant 181 : index
    %33 = vector.load %arg7[%c0_14, %c181] : memref<16x384xbf16, #tpu.memory_space<vmem>>, vector<12x16xbf16>
    tpu.vector_store %arg7[%c0_14, %c181], %32 {strides = array<i32>} : memref<16x384xbf16, #tpu.memory_space<vmem>>, vector<12x16xbf16>,
    %34 = vector.extract_strided_slice %3 {offsets = [0, 10, 0], sizes = [12, 1, 16], strides = [1, 1, 1]} : vector<12x16x16xbf16> to vector<12x1x16xbf16>
    %35 = vector.shape_cast %34 : vector<12x1x16xbf16> to vector<12x16xbf16>
    %c0_15 = arith.constant 0 : index
    %c199 = arith.constant 199 : index
    %36 = vector.load %arg7[%c0_15, %c199] : memref<16x384xbf16, #tpu.memory_space<vmem>>, vector<12x16xbf16>
    tpu.vector_store %arg7[%c0_15, %c199], %35 {strides = array<i32>} : memref<16x384xbf16, #tpu.memory_space<vmem>>, vector<12x16xbf16>,
    %37 = vector.extract_strided_slice %3 {offsets = [0, 11, 0], sizes = [12, 1, 16], strides = [1, 1, 1]} : vector<12x16x16xbf16> to vector<12x1x16xbf16>
    %38 = vector.shape_cast %37 : vector<12x1x16xbf16> to vector<12x16xbf16>
    %c0_16 = arith.constant 0 : index
    %c217 = arith.constant 217 : index
    %39 = vector.load %arg7[%c0_16, %c217] : memref<16x384xbf16, #tpu.memory_space<vmem>>, vector<12x16xbf16>
    tpu.vector_store %arg7[%c0_16, %c217], %38 {strides = array<i32>} : memref<16x384xbf16, #tpu.memory_space<vmem>>, vector<12x16xbf16>,
    %40 = vector.extract_strided_slice %3 {offsets = [0, 12, 0], sizes = [12, 1, 16], strides = [1, 1, 1]} : vector<12x16x16xbf16> to vector<12x1x16xbf16>
    %41 = vector.shape_cast %40 : vector<12x1x16xbf16> to vector<12x16xbf16>
    %c0_17 = arith.constant 0 : index
    %c235 = arith.constant 235 : index
    %42 = vector.load %arg7[%c0_17, %c235] : memref<16x384xbf16, #tpu.memory_space<vmem>>, vector<12x16xbf16>
    tpu.vector_store %arg7[%c0_17, %c235], %41 {strides = array<i32>} : memref<16x384xbf16, #tpu.memory_space<vmem>>, vector<12x16xbf16>,
    %43 = vector.extract_strided_slice %3 {offsets = [0, 13, 0], sizes = [12, 1, 16], strides = [1, 1, 1]} : vector<12x16x16xbf16> to vector<12x1x16xbf16>
    %44 = vector.shape_cast %43 : vector<12x1x16xbf16> to vector<12x16xbf16>
    %c0_18 = arith.constant 0 : index
    %c253 = arith.constant 253 : index
    %45 = vector.load %arg7[%c0_18, %c253] : memref<16x384xbf16, #tpu.memory_space<vmem>>, vector<12x16xbf16>
    tpu.vector_store %arg7[%c0_18, %c253], %44 {strides = array<i32>} : memref<16x384xbf16, #tpu.memory_space<vmem>>, vector<12x16xbf16>,
    %46 = vector.extract_strided_slice %3 {offsets = [0, 14, 0], sizes = [12, 1, 16], strides = [1, 1, 1]} : vector<12x16x16xbf16> to vector<12x1x16xbf16>
    %47 = vector.shape_cast %46 : vector<12x1x16xbf16> to vector<12x16xbf16>
    %c0_19 = arith.constant 0 : index
    %c271 = arith.constant 271 : index
    %48 = vector.load %arg7[%c0_19, %c271] : memref<16x384xbf16, #tpu.memory_space<vmem>>, vector<12x16xbf16>
    tpu.vector_store %arg7[%c0_19, %c271], %47 {strides = array<i32>} : memref<16x384xbf16, #tpu.memory_space<vmem>>, vector<12x16xbf16>,
    %49 = vector.extract_strided_slice %3 {offsets = [0, 15, 0], sizes = [12, 1, 16], strides = [1, 1, 1]} : vector<12x16x16xbf16> to vector<12x1x16xbf16>
    %50 = vector.shape_cast %49 : vector<12x1x16xbf16> to vector<12x16xbf16>
    %c0_20 = arith.constant 0 : index
    %c289 = arith.constant 289 : index
    %51 = vector.load %arg7[%c0_20, %c289] : memref<16x384xbf16, #tpu.memory_space<vmem>>, vector<12x16xbf16>
    tpu.vector_store %arg7[%c0_20, %c289], %50 {strides = array<i32>} : memref<16x384xbf16, #tpu.memory_space<vmem>>, vector<12x16xbf16>,
    %c0_21 = arith.constant 0 : index
    %c0_22 = arith.constant 0 : index
    %52 = vector.load %arg7[%c0_21, %c0_22] : memref<16x384xbf16, #tpu.memory_space<vmem>>, vector<16x384xbf16>
    %53 = vector.extract_strided_slice %52 {offsets = [0, 0], sizes = [16, 288], strides = [1, 1]} : vector<16x384xbf16> to vector<16x288xbf16>
    %54 = vector.extract_strided_slice %52 {offsets = [0, 1], sizes = [16, 288], strides = [1, 1]} : vector<16x384xbf16> to vector<16x288xbf16>
    %55 = vector.extract_strided_slice %52 {offsets = [0, 2], sizes = [16, 288], strides = [1, 1]} : vector<16x384xbf16> to vector<16x288xbf16>
    %56 = vector.extract_strided_slice %52 {offsets = [0, 18], sizes = [16, 288], strides = [1, 1]} : vector<16x384xbf16> to vector<16x288xbf16>
    %57 = vector.extract_strided_slice %52 {offsets = [0, 19], sizes = [16, 288], strides = [1, 1]} : vector<16x384xbf16> to vector<16x288xbf16>
    %58 = vector.extract_strided_slice %52 {offsets = [0, 20], sizes = [16, 288], strides = [1, 1]} : vector<16x384xbf16> to vector<16x288xbf16>
    %59 = vector.extract_strided_slice %52 {offsets = [0, 36], sizes = [16, 288], strides = [1, 1]} : vector<16x384xbf16> to vector<16x288xbf16>
    %60 = vector.extract_strided_slice %52 {offsets = [0, 37], sizes = [16, 288], strides = [1, 1]} : vector<16x384xbf16> to vector<16x288xbf16>
    %61 = vector.extract_strided_slice %52 {offsets = [0, 38], sizes = [16, 288], strides = [1, 1]} : vector<16x384xbf16> to vector<16x288xbf16>
    %62 = tpu.concatenate %53, %54, %55, %56, %57, %58, %59, %60, %61 in 0 : vector<16x288xbf16>, vector<16x288xbf16>, vector<16x288xbf16>, vector<16x288xbf16>, vector<16x288xbf16>, vector<16x288xbf16>, vector<16x288xbf16>, vector<16x288xbf16>, vector<16x288xbf16> -> vector<144x288xbf16>
    %c0_23 = arith.constant 0 : index
    %c0_24 = arith.constant 0 : index
    %63 = vector.load %arg2[%c0_23, %c0_24] : memref<12x144xbf16, #tpu.memory_space<vmem>>, vector<12x144xbf16>
    %cst_25 = arith.constant dense<0.000000e+00> : vector<12x288xf32>
    %64 = tpu.matmul %63, %62, %cst_25 {dimension_numbers = #tpu.dot_dimension_numbers<[1], [0], [0], [1], [0, 0, 1, 1], [], []>} : vector<12x144xbf16>, vector<144x288xbf16>, vector<12x288xf32> -> vector<12x288xf32>
    %c0_26 = arith.constant 0 : index
    %c0_27 = arith.constant 0 : index
    %65 = vector.load %arg3[%c0_26, %c0_27] : memref<12x1xf32, #tpu.memory_space<vmem>>, vector<12x1xf32>
    %66 = vector.broadcast %65 : vector<12x1xf32> to vector<12x288xf32>
    %67 = arith.addf %64, %66 : vector<12x288xf32>
    %cst_28 = arith.constant 0.000000e+00 : f32
    %68 = vector.broadcast %cst_28 : f32 to vector<12x288xf32>
    %69 = arith.maximumf %67, %68 : vector<12x288xf32>
    %c0_29 = arith.constant 0 : index
    %c0_30 = arith.constant 0 : index
    %70 = vector.load %arg4[%c0_29, %c0_30] : memref<12x1xf32, #tpu.memory_space<vmem>>, vector<12x1xf32>
    %71 = vector.broadcast %70 : vector<12x1xf32> to vector<12x288xf32>
    %72 = arith.mulf %69, %71 : vector<12x288xf32>
    %cst_31 = arith.constant dense<0.000000e+00> : vector<288xf32>
    %73 = vector.multi_reduction <add>, %72, %cst_31 [0] : vector<12x288xf32> to vector<288xf32>
    %74 = vector.shape_cast %73 : vector<288xf32> to vector<1x288xf32>
    %c0_32 = arith.constant 0 : index
    %c0_33 = arith.constant 0 : index
    %75 = vector.load %arg5[%c0_32, %c0_33] : memref<1x1xf32, #tpu.memory_space<vmem>>, vector<1x1xf32>
    %76 = vector.broadcast %75 : vector<1x1xf32> to vector<1x288xf32>
    %77 = arith.addf %74, %76 : vector<1x288xf32>
    %78 = arith.negf %77 : vector<1x288xf32>
    %79 = math.exp %78 : vector<1x288xf32>
    %cst_34 = arith.constant 1.000000e+00 : f32
    %80 = vector.broadcast %cst_34 : f32 to vector<1x288xf32>
    %81 = arith.addf %80, %79 : vector<1x288xf32>
    %82 = arith.divf %80, %81 : vector<1x288xf32>
    %83 = vector.shape_cast %82 : vector<1x288xf32> to vector<1x1x288xf32>
    %c0_35 = arith.constant 0 : index
    %c0_36 = arith.constant 0 : index
    %c0_37 = arith.constant 0 : index
    %84 = vector.load %arg6[%c0_35, %c0_36, %c0_37] : memref<1x1x288xf32, #tpu.memory_space<vmem>>, vector<1x1x288xf32>
    tpu.vector_store %arg6[%c0_35, %c0_36, %c0_37], %83 {strides = array<i32>} : memref<1x1x288xf32, #tpu.memory_space<vmem>>, vector<1x1x288xf32>,
    return
  }
  func.func @transform_0(%arg0: i32) -> (i32, i32, i32, i32) {
    %c0_i32 = arith.constant 0 : i32
    %c0_i32_0 = arith.constant 0 : i32
    %c0_i32_1 = arith.constant 0 : i32
    %c0_i32_2 = arith.constant 0 : i32
    return %arg0, %c0_i32, %c0_i32_0, %c0_i32_1 : i32, i32, i32, i32
  }
  func.func @transform_1(%arg0: i32) -> (i32, i32) {
    %c0_i32 = arith.constant 0 : i32
    %c0_i32_0 = arith.constant 0 : i32
    %c0_i32_1 = arith.constant 0 : i32
    return %c0_i32, %c0_i32_0 : i32, i32
  }
  func.func @transform_2(%arg0: i32) -> (i32, i32) {
    %c0_i32 = arith.constant 0 : i32
    %c0_i32_0 = arith.constant 0 : i32
    %c0_i32_1 = arith.constant 0 : i32
    return %c0_i32, %c0_i32_0 : i32, i32
  }
  func.func @transform_3(%arg0: i32) -> (i32, i32) {
    %c0_i32 = arith.constant 0 : i32
    %c0_i32_0 = arith.constant 0 : i32
    %c0_i32_1 = arith.constant 0 : i32
    return %c0_i32, %c0_i32_0 : i32, i32
  }
  func.func @transform_4(%arg0: i32) -> (i32, i32) {
    %c0_i32 = arith.constant 0 : i32
    %c0_i32_0 = arith.constant 0 : i32
    %c0_i32_1 = arith.constant 0 : i32
    return %c0_i32, %c0_i32_0 : i32, i32
  }
  func.func @transform_5(%arg0: i32) -> (i32, i32, i32) {
    %c0_i32 = arith.constant 0 : i32
    %c0_i32_0 = arith.constant 0 : i32
    %c0_i32_1 = arith.constant 0 : i32
    return %arg0, %c0_i32, %c0_i32_0 : i32, i32, i32
  }
}

</mosaic_0001>

<bundles_post_ra>
// kernel: tpu_custom_call.1
= control target key start
LH: loop header
LB: loop body
LE: loop exit
PB: predicated region body
PF: predicated region fallthrough
CT: control target
= control target key end

     0   :  { %s2158_s0 = inlined_call_operand.hbm [shape: bf16[2,12,16,16], index: 0, kind: input, shape index: {}]   ;;  %s2159_s1 = inlined_call_operand.vmem [shape: bf16[12,144], index: 1, kind: input, shape index: {}]   ;;  %s2160_s2 = inlined_call_operand.vmem [shape: f32[12,1], index: 2, kind: input, shape index: {}]   ;;  %s2161_s3 = inlined_call_operand.vmem [shape: f32[12,1], index: 3, kind: input, shape index: {}]   ;;  %s2162_s4 = inlined_call_operand.<no memory space> [shape: f32[1,1], index: 4, kind: input, shape index: {}]   ;;  %s2163_s5 = inlined_call_operand.hbm [shape: f32[2,1,288], index: 5, kind: output, shape index: {}]  }
   0x1   :  { %v10_v0 = vstv %s2162_s4 }
   0x2   :  { %11 = vst [vmem:[#allocation3] sm:$0x1] %v10_v0 }
   0x3   :  { %12 = vsyncpa [#allocation5], 0 }
   0x4   :  { %14 = vsyncpa [#allocation5 + $0x1], 0 }
   0x5   :  { %15 = vsyncpa [#allocation6], 0 }
   0x6   :  { %17 = vsyncpa [#allocation6 + $0x1], 0  ;;  %s1531_s20 = smov 0   ;;  %s1533_s21 = smov 0  }
   0x7   :  { %s1535_s22 = smov 0   ;;  %s1537_s23 = smov 0  }
   0x8 LB: > { %s1552_s4 = sadd.s32 4294967295, %s1469_s23   ;;  %s1217_s24 = sadd.s32 4294967294, %s1469_s23   ;;  %s1469_s23 = sphi %s1537_s23, %s2175_s23   ;;  %s1465_s22 = sphi %s1535_s22, %s2174_s22   ;;  %s1461_s21 = sphi %s1533_s21, %s2173_s21   ;;  %s1457_s20 = sphi %s1531_s20, %s2172_s20  }
   0x9   : > { %s1556_s25 = sadd.s32 1, %s1469_s23   ;;  %s30_s26 = sadd.s32 1, %s1465_s22 }
   0xa   : > { %s27_s27 = ssub.s32 %s1469_s23, %s1556_s25  ;;  %p37_p0 = scmp.ne.s32.totalorder %s1465_s22, %s1461_s21 }
   0xb   : > { %p28_p1 = scmp.eq.s32.totalorder %s27_s27, 0  ;;  %p38_p2 = scmp.eq.s32.totalorder %s1469_s23, 0 }
   0xc   : > { %p43_p3 = scmp.ne.s32.totalorder %s1461_s21, %s1457_s20  ;;  %p44_p4 = scmp.eq.s32.totalorder %s1552_s4, 0 }
   0xd   : > { %s1568_s28 = scalar_select %p28_p1, %s1465_s22, %s30_s26  }
   0xe   : > { %p39_p5 = por %p38_p2, %p37_p0  ;;  %p1570_p6 = por %p44_p4, %p43_p3 }
   0xf   : > { %p151_p7 = scmp.eq.s32.totalorder %s1552_s4, 1  ;;  %p157_p8 = scmp.eq.s32.totalorder %s1217_s24, 1 }
  0x10   : > { %p1273_p10 = scmp.lt.s32.totalorder %s1469_s23, 2  ;;  %s189_s7 = sand.u32 1, %s1465_s22  }
  0x11   : > { %p1577_p11 = por %p151_p7, %p37_p0  ;;  %p1581_p12 = por %p157_p8, %p43_p3 }
  0x12   : > { %s1257_s8 = smul.u32 1536, %s1469_s23  ;;  %p1592_p13 = pnand %p1273_p10, %p39_p5 }
  0x13   : > { %s2166_s30 = scalar_select %p1577_p11, 1, 0 }
  0x14   : > { %s2167_s6 = scalar_select %p1581_p12, 1, 0 }
  0x15   : > { %s1256_s9 = smul.u32 96, %s189_s7  ;;  %s1590_s12 = scalar_lea.hbm %s2158_s0, %s1257_s8 }
  0x16   : > { %s1598_s16 = scalar_lea.sflag [#allocation5], %s189_s7  ;;  %s1373_s17 = scalar_lea.hbm %s1590_s12, 1536 }
  0x17   : > { %s193_s14 = scalar_lea.vmem [#allocation4], %s1256_s9  ;;  %p1374_p0 = scmp.ne.s32.totalorder %s1590_s12, %s1373_s17 }
  0x18   : > { %s200_s15 = sshll.u32 %s193_s14, 4  ;;  %p1375_p1 = pneg %p1592_p13  ;;  %s1596_s15 = int_to_ptr.vmem [resolvable:$true] %s200_s15 }
  0x19   : > { %s1378_s24 = scalar_lea.hbm %s2158_s0, 3072  ;;  %p1379_p4 = scmp.lt.u32.totalorder %s1590_s12, %s2158_s0 }
  0x1a   : > { %p1376_p2 = pnand %p1375_p1, %p1374_p0  ;;  %p1380_p5 = scmp.lt.u32.totalorder %s1378_s24, %s1373_s17 }
  0x1b   : > { %p1382_p8 = scmp.lt.u32.totalorder %s1373_s17, %s1590_s12 }
  0x1c   : > { %p1377_p3 = pneg %p1376_p2  ;;  %p1381_p7 = por %p1380_p5, %p1379_p4 }
  0x1e   : > { %p1383_p10 = por %p1382_p8, %p1381_p7 }
  0x20   : > { %p1384_p9 = pnand %p1383_p10, %p1377_p3 }
  0x22   : > { %1387 = shalt.err (!%p1384_p9)
}
  0x23   : > { %s1388_s7 = scalar_lea.vmem %s1596_s15, 1536  ;;  %s1471_s8 = smov [#allocation4]  }
  0x24   : > { %p1389_p0 = scmp.ne.s32.totalorder %s1596_s15, %s1388_s7  ;;  %s1393_s9 = sshll.u32 %s1471_s8, 4  ;;  %s1394_s9 = int_to_ptr.vmem [resolvable:$false] %s1393_s9 }
  0x25   : > { %s1395_s10 = scalar_lea.vmem %s1394_s9, 3072  ;;  %p1396_p11 = scmp.lt.s32.totalorder %s1596_s15, %s1394_s9 }
  0x26   : > { %p1391_p2 = pnand %p1389_p0, %p1375_p1  ;;  %p1397_p4 = scmp.lt.s32.totalorder %s1395_s10, %s1388_s7 }
  0x28   : > { %p1392_p12 = pneg %p1391_p2  ;;  %p1398_p5 = por %p1397_p4, %p1396_p11 }
  0x2a   : > { %p1399_p7 = pnand %p1398_p5, %p1392_p12 }
  0x2c   : > { %1402 = shalt.err (!%p1399_p7)
}
  0x2d   : > { %s1472_s11 = smov 64   ;;  %s1473_s14 = smov 4  }
  0x2e   : > { %1268 = dma.hbm_to_vmem [thread:$0]  (!%p1592_p13), %s1590_s12, 1536, %s1596_s15, %s1598_s16, %s1472_s11, %s1472_s11, %s1473_s14  }
  0x2f   : > { %p1221_p9 = scmp.ge.s32.totalorder %s1469_s23, 1  ;;  %p208_p1 = scmp.lt.s32.totalorder %s1469_s23, 3 }
  0x31   : > { %p209_p3 = pnand %p1221_p9, %p208_p1 }
  0x32   : > { %s1629_s17 = sand.u32 (!%p209_p3), 1, %s1461_s21  }
  0x33   : > { %212 = sbr.rel (%p209_p3) target bundleno = 732 (0x2dc), region = 40  ;;  %s215_s19 = scalar_lea.sflag (!%p209_p3), [#allocation5], %s1629_s17 }
  0x34   : > { %s1258_s18 = smul.u32 (!%p209_p3), 96, %s1629_s17 }
  0x36   : > { %s1633_s24 = scalar_lea.vmem (!%p209_p3), [#allocation4], %s1258_s18 }
  0x3a   : > { %1448 = dma.done.wait (%p1570_p6), %s215_s19, 1536  }
  0x3b   : > { %1450 = vsyncadd (%p1570_p6), %s215_s19, 4294965760  ;;  %v1474_v1 = vmov 0   ;;  %vm322_vm0 = vcmask 1041409   ;;  %vm325_vm1 = vcmask 1042434   ;;  %vm328_vm2 = vcmask 1043459   ;;  %s1475_s29 = smov 127  }
  0x3c   : > { %247 = vst [vmem:[#allocation2 + $0x8] sm:$0xff] %v1474_v1  ;;  %246 = vst [vmem:[#allocation2] sm:$0xff] %v1474_v1  ;;  %976 = vmatprep.subr.bf16.mxu1 %v1474_v1  ;;  %1333 = vset.pattern.permute.xlu1 %v1474_v1  ;;  %vm331_vm3 = vcmask 1044484   ;;  %v1334_v2 = vld [vmem:[%s1633_s24] ss:$0 sps:$4 sm:$0xff]   ;;  %vm334_vm4 = vcmask 1045509  }
  0x3d   : > { %248 = vst [vmem:[#allocation2 + $0x10] sm:$0xff] %v1474_v1  ;;  %1332 = vset.pattern.permute.xlu0 %v1474_v1  ;;  %v1335_v3 = vld [vmem:[%s1633_s24 + $0x8] ss:$0 sps:$4 sm:$0xff]   ;;  %v1336_v4 = vld [vmem:[%s1633_s24 + $0x10] ss:$0 sps:$4 sm:$0xff]   ;;  %vm337_vm5 = vcmask 1046534   ;;  %v1654_v11 = vunpack.c.l.b16 %v1334_v2 }
  0x3e   : > { %v1337_v5 = vld [vmem:[%s1633_s24 + $0x18] ss:$0 sps:$4 sm:$0xff]   ;;  %v1338_v6 = vld [vmem:[%s1633_s24 + $0x20] ss:$0 sps:$4 sm:$0xff]   ;;  %v1339_v7 = vld [vmem:[%s1633_s24 + $0x28] ss:$0 sps:$4 sm:$0xff]   ;;  %v1656_v12 = vunpack.c.l.b16 %v1335_v3  ;;  %v1658_v13 = vunpack.c.l.b16 %v1336_v4 }
  0x3f   : > { %v1340_v8 = vld [vmem:[%s1633_s24 + $0x30] ss:$0 sps:$4 sm:$0xff]   ;;  %v1341_v9 = vld [vmem:[%s1633_s24 + $0x38] ss:$0 sps:$4 sm:$0xff]   ;;  %v1342_v10 = vld [vmem:[%s1633_s24 + $0x40] ss:$0 sps:$4 sm:$0xff]   ;;  %v1663_v17 = vunpack.c.l.b16 %v1337_v5  ;;  %v1665_v18 = vunpack.c.l.b16 %v1338_v6  ;;  %v1667_v19 = vunpack.c.l.b16 %v1339_v7 }
  0x40   : > { %vm340_vm6 = vcmask 1047559   ;;  %v1343_v14 = vld [vmem:[%s1633_s24 + $0x48] ss:$0 sps:$4 sm:$0xff]   ;;  %v1344_v15 = vld [vmem:[%s1633_s24 + $0x50] ss:$0 sps:$4 sm:$0xff]   ;;  %v1669_v20 = vunpack.c.l.b16 %v1340_v8  ;;  %v1671_v21 = vunpack.c.l.b16 %v1341_v9  ;;  %v1673_v22 = vunpack.c.l.b16 %v1342_v10  ;;  %s1476_s12 = smov 19  }
  0x41   : > { %v1345_v16 = vld [vmem:[%s1633_s24 + $0x58] ss:$0 sps:$4 sm:$0xff]   ;;  %v486_v23 = vrot.slane %v1654_v11, 6  ;;  %v1676_v24 = vunpack.c.l.b16 %v1343_v14  ;;  %v1678_v25 = vunpack.c.l.b16 %v1344_v15  ;;  %v487_v27 = vrot.slane %v1656_v12, 5  ;;  %v1346_v0 = vld [vmem:[%s1633_s24 + $0x4] ss:$0 sps:$4 sm:$0xff]  }
  0x42   : > { %v1680_v26 = vunpack.c.l.b16 %v1345_v16  ;;  %v489_v28 = vrot.slane %v1658_v13, 4  ;;  %v491_v29 = vrot.slane %v1663_v17, 3  ;;  %v493_v30 = vrot.slane %v1665_v18, 2  ;;  %v1347_v6 = vld [vmem:[%s1633_s24 + $0xc] ss:$0 sps:$4 sm:$0xff]   ;;  %s1477_s13 = smov 17  }
  0x43   : > { %v495_v31 = vrot.slane %v1667_v19, 1  ;;  %v488_v32 = vsel %vm322_vm0, %v487_v27, %v486_v23  ;;  %v498_v33 = vrot.slane %v1671_v21, 7  ;;  %v500_v34 = vrot.slane %v1673_v22, 6  ;;  %v1348_v7 = vld [vmem:[%s1633_s24 + $0x14] ss:$0 sps:$4 sm:$0xff]   ;;  %s1478_s15 = smov 35  }
  0x44   : > { %v501_v35 = vrot.slane %v1676_v24, 5  ;;  %v490_v36 = vsel %vm325_vm1, %v489_v28, %v488_v32  ;;  %v503_v37 = vrot.slane %v1678_v25, 4  ;;  %v505_v38 = vrot.slane %v1680_v26, 3  ;;  %v1349_v15 = vld [vmem:[%s1633_s24 + $0x1c] ss:$0 sps:$4 sm:$0xff]   ;;  %s1479_s16 = smov 37  }
  0x45   : > { %v321_v39 = vrot.slane %v1656_v12, 7  ;;  %v492_v40 = vsel %vm328_vm2, %v491_v29, %v490_v36  ;;  %v324_v42 = vrot.slane %v1658_v13, 6  ;;  %v327_v43 = vrot.slane %v1663_v17, 5  ;;  %v1350_v16 = vld [vmem:[%s1633_s24 + $0x24] ss:$0 sps:$4 sm:$0xff]   ;;  %s1480_s26 = smov 53  }
  0x46   : > { %v502_v41 = vsel %vm322_vm0, %v501_v35, %v500_v34  ;;  %v494_v44 = vsel %vm331_vm3, %v493_v30, %v492_v40  ;;  %v330_v47 = vrot.slane %v1665_v18, 4  ;;  %v333_v51 = vrot.slane %v1667_v19, 3  ;;  %v1351_v30 = vld [vmem:[%s1633_s24 + $0x2c] ss:$0 sps:$4 sm:$0xff]   ;;  %v1352_v35 = vld [vmem:[%s1633_s24 + $0x34] ss:$0 sps:$4 sm:$0xff]  }
  0x47   : > { %v504_v45 = vsel %vm325_vm1, %v503_v37, %v502_v41  ;;  %v323_v46 = vsel %vm322_vm0, %v321_v39, %v1654_v11  ;;  %v496_v48 = vsel %vm334_vm4, %v495_v31, %v494_v44  ;;  %v336_v54 = vrot.slane %v1669_v20, 2  ;;  %v1353_v36 = vld [vmem:[%s1633_s24 + $0x3c] ss:$0 sps:$4 sm:$0xff]   ;;  %v1354_v40 = vld [vmem:[%s1633_s24 + $0x44] ss:$0 sps:$4 sm:$0xff]   ;;  %s1481_s27 = smov 55  }
  0x48   : > { %v506_v49 = vsel %vm328_vm2, %v505_v38, %v504_v45  ;;  %v326_v50 = vsel %vm325_vm1, %v324_v42, %v323_v46  ;;  %v497_v52 = vsel %vm337_vm5, %v1669_v20, %v496_v48  ;;  %v339_v55 = vrot.slane %v1671_v21, 1  ;;  %v1355_v41 = vld [vmem:[%s1633_s24 + $0x4c] ss:$0 sps:$4 sm:$0xff]   ;;  %v1356_v45 = vld [vmem:[%s1633_s24 + $0x54] ss:$0 sps:$4 sm:$0xff]   ;;  %s1482_s7 = smov 71  }
  0x49   : > { %v329_v53 = vsel %vm328_vm2, %v327_v43, %v326_v50  ;;  %v499_v56 = vsel %vm340_vm6, %v498_v33, %v497_v52  ;;  %v342_v58 = vrot.slane %v1676_v24, 7  ;;  %v344_v59 = vrot.slane %v1678_v25, 6  ;;  %v1357_v46 = vld [vmem:[%s1633_s24 + $0x5c] ss:$0 sps:$4 sm:$0xff]   ;;  %s1483_s8 = smov 73   ;;  %s1484_s9 = smov 89  }
  0x4a   : > { %v332_v57 = vsel %vm331_vm3, %v330_v47, %v329_v53  ;;  %v507_v60 = vpack.c.b16 %v506_v49, %v499_v56  ;;  %v346_v62 = vrot.slane %v1680_v26, 5  ;;  %v515_v63 = vrot.slane %v1654_v11, 7  ;;  %s1485_s10 = smov 125   ;;  %s1486_s11 = smov 91  }
  0x4b   : > { %v335_v61 = vsel %vm334_vm4, %v333_v51, %v332_v57  ;;  %v343_v3 = vsel %vm322_vm0, %v342_v58, %v1673_v22  ;;  %v516_v4 = vrot.slane %v1656_v12, 6  ;;  %v518_v5 = vrot.slane %v1658_v13, 5  ;;  %s1487_s14 = smov 107   ;;  %s1488_s18 = smov 15  }
  0x4c   : > { %v338_v2 = vsel %vm337_vm5, %v336_v54, %v335_v61  ;;  %508 = vrot.lane.b32.xlu0 %v507_v60, %s1475_s29  ;;  %v345_v9 = vsel %vm325_vm1, %v344_v59, %v343_v3  ;;  %v520_v10 = vrot.slane %v1663_v17, 4  ;;  %v522_v14 = vrot.slane %v1665_v18, 3  ;;  %s1489_s19 = smov 109   ;;  %s1490_s24 = smov 33  }
  0x4d   : > { %v341_v8 = vsel %vm340_vm6, %v339_v55, %v338_v2  ;;  %v347_v23 = vsel %vm328_vm2, %v346_v62, %v345_v9  ;;  %v517_v27 = vsel %vm322_vm0, %v516_v4, %v515_v63  ;;  %v524_v28 = vrot.slane %v1667_v19, 2  ;;  %p2169_p11 = scmp.ne.s32.totalorder %s2166_s30, 0 }
  0x4e   : > { %v526_v29 = vrot.slane %v1669_v20, 1  ;;  %v348_v31 = vpack.c.b16 %v347_v23, %v341_v8  ;;  %v519_v32 = vsel %vm325_vm1, %v518_v5, %v517_v27  ;;  %v529_v33 = vrot.slane %v1673_v22, 7 }
  0x4f   : > { %v530_v34 = vrot.slane %v1676_v24, 6  ;;  %v521_v37 = vsel %vm328_vm2, %v520_v10, %v519_v32  ;;  %v532_v38 = vrot.slane %v1678_v25, 5  ;;  %v534_v39 = vrot.slane %v1680_v26, 4 }
  0x50   : > { %v1750_v42 = vunpack.c.l.b16 %v1346_v0  ;;  %349 = vrot.lane.b32.xlu1 %v348_v31, %s1476_s12  ;;  %v523_v43 = vsel %vm331_vm3, %v522_v14, %v521_v37  ;;  %v1756_v47 = vunpack.c.l.b16 %v1347_v6  ;;  %v1758_v48 = vunpack.c.l.b16 %v1348_v7  ;;  %s1491_s12 = smov 126  }
  0x51   : > { %v531_v44 = vsel %vm322_vm0, %v530_v34, %v529_v33  ;;  %v525_v49 = vsel %vm334_vm4, %v524_v28, %v523_v43  ;;  %v1762_v51 = vunpack.c.l.b16 %v1349_v15  ;;  %v1764_v52 = vunpack.c.l.b16 %v1350_v16 }
  0x52   : > { %v533_v50 = vsel %vm325_vm1, %v532_v38, %v531_v44  ;;  %v527_v53 = vsel %vm337_vm5, %v526_v29, %v525_v49  ;;  %v1768_v55 = vunpack.c.l.b16 %v1351_v30  ;;  %v1770_v56 = vunpack.c.l.b16 %v1352_v35 }
  0x53   : > { %v535_v54 = vsel %vm328_vm2, %v534_v39, %v533_v50  ;;  %v528_v57 = vsel %vm340_vm6, %v1671_v21, %v527_v53  ;;  %v1774_v58 = vunpack.c.l.b16 %v1353_v36  ;;  %v1776_v59 = vunpack.c.l.b16 %v1354_v40 }
  0x54   : > { %v1778_v60 = vunpack.c.l.b16 %v1355_v41  ;;  %v536_v61 = vpack.c.b16 %v535_v54, %v528_v57  ;;  %v1780_v62 = vunpack.c.l.b16 %v1356_v45  ;;  %v1782_v63 = vunpack.c.l.b16 %v1357_v46 }
  0x55   : > { %v590_v0 = vrot.slane %v1756_v47, 7  ;;  %v592_v2 = vrot.slane %v1758_v48, 6  ;;  %v594_v3 = vrot.slane %v1762_v51, 5  ;;  %v596_v4 = vrot.slane %v1764_v52, 4 }
  0x56   : > { %v598_v5 = vrot.slane %v1768_v55, 3  ;;  %537 = vrot.lane.b32.xlu0 %v536_v61, %s1477_s13  ;;  %v600_v7 = vrot.slane %v1770_v56, 2  ;;  %v602_v8 = vrot.slane %v1774_v58, 1  ;;  %v604_v9 = vrot.slane %v1778_v60, 7  ;;  %s1492_s13 = smov 110  }
  0x57   : > { %v591_v6 = vsel %vm322_vm0, %v590_v0, %v1750_v42  ;;  %v606_v14 = vrot.slane %v1780_v62, 6  ;;  %v608_v15 = vrot.slane %v1782_v63, 5  ;;  %v354_v16 = vrot.slane %v1654_v11, 1 }
  0x58   : > { %v593_v10 = vsel %vm325_vm1, %v592_v2, %v591_v6  ;;  %v605_v27 = vsel %vm322_vm0, %v604_v9, %v1776_v59  ;;  %v356_v28 = vrot.slane %v1658_v13, 7  ;;  %v358_v29 = vrot.slane %v1663_v17, 6 }
  0x59   : > { %v595_v23 = vsel %vm328_vm2, %v594_v3, %v593_v10  ;;  %v607_v31 = vsel %vm325_vm1, %v606_v14, %v605_v27  ;;  %v355_v32 = vsel %vm322_vm0, %v1656_v12, %v354_v16  ;;  %v360_v33 = vrot.slane %v1665_v18, 5 }
  0x5a   : > { %v597_v30 = vsel %vm331_vm3, %v596_v4, %v595_v23  ;;  %v609_v35 = vsel %vm328_vm2, %v608_v15, %v607_v31  ;;  %v357_v36 = vsel %vm325_vm1, %v356_v28, %v355_v32  ;;  %v362_v37 = vrot.slane %v1667_v19, 4 }
  0x5b   : > { %v599_v34 = vsel %vm334_vm4, %v598_v5, %v597_v30  ;;  %v359_v39 = vsel %vm328_vm2, %v358_v29, %v357_v36  ;;  %v364_v40 = vrot.slane %v1669_v20, 3  ;;  %v366_v41 = vrot.slane %v1671_v21, 2 }
  0x5c   : > { %v601_v38 = vsel %vm337_vm5, %v600_v7, %v599_v34  ;;  %v361_v44 = vsel %vm331_vm3, %v360_v33, %v359_v39  ;;  %v368_v45 = vrot.slane %v1673_v22, 1  ;;  %v370_v46 = vrot.slane %v1678_v25, 7 }
  0x5d   : > { %v603_v43 = vsel %vm340_vm6, %v602_v8, %v601_v38  ;;  %v363_v50 = vsel %vm334_vm4, %v362_v37, %v361_v44  ;;  %v372_v53 = vrot.slane %v1680_v26, 6  ;;  %v616_v54 = vrot.slane %v1750_v42, 1 }
  0x5e   : > { %v610_v49 = vpack.c.b16 %v609_v35, %v603_v43  ;;  %v365_v57 = vsel %vm337_vm5, %v364_v40, %v363_v50  ;;  %v369_v61 = vsel %vm322_vm0, %v1676_v24, %v368_v45  ;;  %v618_v0 = vrot.slane %v1758_v48, 7 }
  0x5f   : > { %v620_v2 = vrot.slane %v1762_v51, 6  ;;  %v367_v3 = vsel %vm340_vm6, %v366_v41, %v365_v57  ;;  %v371_v4 = vsel %vm325_vm1, %v370_v46, %v369_v61  ;;  %v617_v5 = vsel %vm322_vm0, %v1756_v47, %v616_v54 }
  0x60   : > { %611 = vrot.lane.b32.xlu1 %v610_v49, %s1478_s15  ;;  %v622_v6 = vrot.slane %v1764_v52, 5  ;;  %v373_v7 = vsel %vm328_vm2, %v372_v53, %v371_v4  ;;  %v619_v8 = vsel %vm325_vm1, %v618_v0, %v617_v5  ;;  %v624_v9 = vrot.slane %v1768_v55, 4  ;;  %s1493_s15 = smov 108  }
  0x61   : > { %v626_v10 = vrot.slane %v1770_v56, 3  ;;  %v374_v14 = vpack.c.b16 %v373_v7, %v367_v3  ;;  %v621_v15 = vsel %vm328_vm2, %v620_v2, %v619_v8  ;;  %v628_v16 = vrot.slane %v1774_v58, 2 }
  0x62   : > { %v630_v23 = vrot.slane %v1776_v59, 1  ;;  %v623_v27 = vsel %vm331_vm3, %v622_v6, %v621_v15  ;;  %v632_v28 = vrot.slane %v1780_v62, 7  ;;  %v634_v29 = vrot.slane %v1782_v63, 6 }
  0x63   : > { %v380_v30 = vrot.slane %v1654_v11, 2  ;;  %375 = vrot.lane.b32.xlu0 %v374_v14, %s1479_s16  ;;  %v625_v31 = vsel %vm334_vm4, %v624_v9, %v623_v27  ;;  %v381_v33 = vrot.slane %v1656_v12, 1  ;;  %v384_v34 = vrot.slane %v1663_v17, 7  ;;  %s1494_s16 = smov 92  }
  0x64   : > { %v631_v32 = vsel %vm322_vm0, %v1778_v60, %v630_v23  ;;  %v627_v35 = vsel %vm337_vm5, %v626_v10, %v625_v31  ;;  %v386_v37 = vrot.slane %v1665_v18, 6  ;;  %v388_v38 = vrot.slane %v1667_v19, 5 }
  0x65   : > { %v633_v36 = vsel %vm325_vm1, %v632_v28, %v631_v32  ;;  %v629_v39 = vsel %vm340_vm6, %v628_v16, %v627_v35  ;;  %v382_v41 = vsel %vm322_vm0, %v381_v33, %v380_v30  ;;  %v390_v43 = vrot.slane %v1669_v20, 4 }
  0x66   : > { %v635_v40 = vsel %vm328_vm2, %v634_v29, %v633_v36  ;;  %v383_v45 = vsel %vm325_vm1, %v1658_v13, %v382_v41  ;;  %v392_v46 = vrot.slane %v1671_v21, 3  ;;  %v394_v49 = vrot.slane %v1673_v22, 2 }
  0x67   : > { %v636_v44 = vpack.c.b16 %v635_v40, %v629_v39  ;;  %v385_v50 = vsel %vm328_vm2, %v384_v34, %v383_v45  ;;  %v395_v53 = vrot.slane %v1676_v24, 1  ;;  %v398_v54 = vrot.slane %v1680_v26, 7 }
  0x68   : > { %v642_v57 = vrot.slane %v1750_v42, 2  ;;  %v387_v61 = vsel %vm331_vm3, %v386_v37, %v385_v50  ;;  %v643_v0 = vrot.slane %v1756_v47, 1  ;;  %v646_v2 = vrot.slane %v1762_v51, 7 }
  0x69   : > { %637 = vrot.lane.b32.xlu1 %v636_v44, %s1480_s26  ;;  %v648_v3 = vrot.slane %v1764_v52, 6  ;;  %v389_v4 = vsel %vm334_vm4, %v388_v38, %v387_v61  ;;  %v396_v5 = vsel %vm322_vm0, %v395_v53, %v394_v49  ;;  %v650_v6 = vrot.slane %v1768_v55, 5 }
  0x6a   : > { %v652_v7 = vrot.slane %v1770_v56, 4  ;;  %v391_v8 = vsel %vm337_vm5, %v390_v43, %v389_v4  ;;  %v397_v9 = vsel %vm325_vm1, %v1678_v25, %v396_v5  ;;  %v644_v10 = vsel %vm322_vm0, %v643_v0, %v642_v57 }
  0x6b   : > { %v654_v14 = vrot.slane %v1774_v58, 3  ;;  %v393_v15 = vsel %vm340_vm6, %v392_v46, %v391_v8  ;;  %v399_v16 = vsel %vm328_vm2, %v398_v54, %v397_v9  ;;  %v645_v23 = vsel %vm325_vm1, %v1758_v48, %v644_v10 }
  0x6c   : > { %v656_v27 = vrot.slane %v1776_v59, 2  ;;  %v400_v28 = vpack.c.b16 %v399_v16, %v393_v15  ;;  %v647_v29 = vsel %vm328_vm2, %v646_v2, %v645_v23  ;;  %v657_v30 = vrot.slane %v1778_v60, 1 }
  0x6d   : > { %v660_v31 = vrot.slane %v1782_v63, 7  ;;  %v649_v32 = vsel %vm331_vm3, %v648_v3, %v647_v29  ;;  %v406_v33 = vrot.slane %v1654_v11, 3  ;;  %v407_v34 = vrot.slane %v1656_v12, 2 }
  0x6e   : > { %v409_v35 = vrot.slane %v1658_v13, 1  ;;  %401 = vrot.lane.b32.xlu0 %v400_v28, %s1481_s27  ;;  %v651_v36 = vsel %vm334_vm4, %v650_v6, %v649_v32  ;;  %v658_v37 = vsel %vm322_vm0, %v657_v30, %v656_v27  ;;  %v412_v38 = vrot.slane %v1665_v18, 7 }
  0x6f   : > { %v414_v39 = vrot.slane %v1667_v19, 6  ;;  %v653_v40 = vsel %vm337_vm5, %v652_v7, %v651_v36  ;;  %v659_v41 = vsel %vm325_vm1, %v1780_v62, %v658_v37  ;;  %v408_v43 = vsel %vm322_vm0, %v407_v34, %v406_v33 }
  0x70   : > { %v416_v44 = vrot.slane %v1669_v20, 5  ;;  %v655_v45 = vsel %vm340_vm6, %v654_v14, %v653_v40  ;;  %v661_v46 = vsel %vm328_vm2, %v660_v31, %v659_v41  ;;  %v410_v49 = vsel %vm325_vm1, %v409_v35, %v408_v43 }
  0x71   : > { %v418_v50 = vrot.slane %v1671_v21, 4  ;;  %v662_v53 = vpack.c.b16 %v661_v46, %v655_v45  ;;  %v411_v54 = vsel %vm328_vm2, %v1663_v17, %v410_v49  ;;  %v420_v57 = vrot.slane %v1673_v22, 3 }
  0x72   : > { %v421_v61 = vrot.slane %v1676_v24, 2  ;;  %v413_v0 = vsel %vm331_vm3, %v412_v38, %v411_v54  ;;  %v423_v2 = vrot.slane %v1678_v25, 1  ;;  %v668_v3 = vrot.slane %v1750_v42, 3 }
  0x73   : > { %v669_v4 = vrot.slane %v1756_v47, 2  ;;  %663 = vrot.lane.b32.xlu1 %v662_v53, %s1482_s7  ;;  %v415_v5 = vsel %vm334_vm4, %v414_v39, %v413_v0  ;;  %v671_v7 = vrot.slane %v1758_v48, 1  ;;  %v674_v8 = vrot.slane %v1764_v52, 7 }
  0x74   : > { %v422_v6 = vsel %vm322_vm0, %v421_v61, %v420_v57  ;;  %v417_v9 = vsel %vm337_vm5, %v416_v44, %v415_v5  ;;  %v676_v15 = vrot.slane %v1768_v55, 6  ;;  %v678_v28 = vrot.slane %v1770_v56, 5 }
  0x75   : > { %v424_v10 = vsel %vm325_vm1, %v423_v2, %v422_v6  ;;  %v670_v14 = vsel %vm322_vm0, %v669_v4, %v668_v3  ;;  %v419_v16 = vsel %vm340_vm6, %v418_v50, %v417_v9  ;;  %v680_v31 = vrot.slane %v1774_v58, 4 }
  0x76   : > { %v425_v23 = vsel %vm328_vm2, %v1680_v26, %v424_v10  ;;  %v672_v27 = vsel %vm325_vm1, %v671_v7, %v670_v14  ;;  %v682_v32 = vrot.slane %v1776_v59, 3  ;;  %v683_v34 = vrot.slane %v1778_v60, 2 }
  0x77   : > { %v426_v29 = vpack.c.b16 %v425_v23, %v419_v16  ;;  %v673_v30 = vsel %vm328_vm2, %v1762_v51, %v672_v27  ;;  %v685_v35 = vrot.slane %v1780_v62, 1  ;;  %v721_v36 = vrot.slane %v1750_v42, 5 }
  0x78   : > { %v675_v33 = vsel %vm331_vm3, %v674_v8, %v673_v30  ;;  %v722_v38 = vrot.slane %v1756_v47, 4  ;;  %v724_v39 = vrot.slane %v1758_v48, 3  ;;  %v726_v40 = vrot.slane %v1762_v51, 2 }
  0x79   : > { %427 = vrot.lane.b32.xlu0 %v426_v29, %s1483_s8  ;;  %v677_v37 = vsel %vm334_vm4, %v676_v15, %v675_v33  ;;  %v684_v43 = vsel %vm322_vm0, %v683_v34, %v682_v32  ;;  %v728_v44 = vrot.slane %v1764_v52, 1  ;;  %v731_v45 = vrot.slane %v1770_v56, 7  ;;  %s1133_s8 = scalar_lea.sflag [#allocation6], %s1629_s17 }
  0x7a   : > { %v679_v41 = vsel %vm337_vm5, %v678_v28, %v677_v37  ;;  %v686_v49 = vsel %vm325_vm1, %v685_v35, %v684_v43  ;;  %v723_v50 = vsel %vm322_vm0, %v722_v38, %v721_v36  ;;  %v733_v53 = vrot.slane %v1774_v58, 6 }
  0x7b   : > { %v681_v46 = vsel %vm340_vm6, %v680_v31, %v679_v41  ;;  %v687_v54 = vsel %vm328_vm2, %v1782_v63, %v686_v49  ;;  %v725_v57 = vsel %vm325_vm1, %v724_v39, %v723_v50  ;;  %v735_v61 = vrot.slane %v1776_v59, 5 }
  0x7c   : > { %v736_v0 = vrot.slane %v1778_v60, 4  ;;  %v688_v2 = vpack.c.b16 %v687_v54, %v681_v46  ;;  %v727_v3 = vsel %vm328_vm2, %v726_v40, %v725_v57  ;;  %v738_v4 = vrot.slane %v1780_v62, 3 }
  0x7d   : > { %v740_v5 = vrot.slane %v1782_v63, 2  ;;  %v729_v6 = vsel %vm331_vm3, %v728_v44, %v727_v3  ;;  %v432_v8 = vrot.slane %v1654_v11, 4  ;;  %v433_v9 = vrot.slane %v1656_v12, 3 }
  0x7e   : > { %v737_v7 = vsel %vm322_vm0, %v736_v0, %v735_v61  ;;  %689 = vrot.lane.b32.xlu1 %v688_v2, %s1484_s9  ;;  %v730_v10 = vsel %vm334_vm4, %v1768_v55, %v729_v6  ;;  %v435_v15 = vrot.slane %v1658_v13, 2  ;;  %v437_v16 = vrot.slane %v1663_v17, 1 }
  0x7f   : > { %v739_v14 = vsel %vm325_vm1, %v738_v4, %v737_v7  ;;  %v732_v23 = vsel %vm337_vm5, %v731_v45, %v730_v10  ;;  %v434_v28 = vsel %vm322_vm0, %v433_v9, %v432_v8  ;;  %v440_v29 = vrot.slane %v1667_v19, 7 }
  0x80   : > { %v741_v27 = vsel %vm328_vm2, %v740_v5, %v739_v14  ;;  %v734_v30 = vsel %vm340_vm6, %v733_v53, %v732_v23  ;;  %v436_v31 = vsel %vm325_vm1, %v435_v15, %v434_v28  ;;  %v442_v32 = vrot.slane %v1669_v20, 6 }
  0x81   : > { %v444_v33 = vrot.slane %v1671_v21, 5  ;;  %v742_v34 = vpack.c.b16 %v741_v27, %v734_v30  ;;  %v438_v35 = vsel %vm328_vm2, %v437_v16, %v436_v31  ;;  %v446_v36 = vrot.slane %v1673_v22, 4 }
  0x82   : > { %v447_v37 = vrot.slane %v1676_v24, 3  ;;  %v439_v38 = vsel %vm331_vm3, %v1665_v18, %v438_v35  ;;  %v449_v39 = vrot.slane %v1678_v25, 2  ;;  %v451_v40 = vrot.slane %v1680_v26, 1 }
  0x83   : > { %v694_v41 = vrot.slane %v1750_v42, 4  ;;  %743 = vrot.lane.b32.xlu0 %v742_v34, %s1485_s10  ;;  %v441_v43 = vsel %vm334_vm4, %v440_v29, %v439_v38  ;;  %v695_v45 = vrot.slane %v1756_v47, 3  ;;  %v697_v46 = vrot.slane %v1758_v48, 2 }
  0x84   : > { %v448_v44 = vsel %vm322_vm0, %v447_v37, %v446_v36  ;;  %v443_v49 = vsel %vm337_vm5, %v442_v32, %v441_v43  ;;  %v699_v53 = vrot.slane %v1762_v51, 1  ;;  %v702_v54 = vrot.slane %v1768_v55, 7 }
  0x85   : > { %v450_v50 = vsel %vm325_vm1, %v449_v39, %v448_v44  ;;  %v445_v57 = vsel %vm340_vm6, %v444_v33, %v443_v49  ;;  %v696_v0 = vsel %vm322_vm0, %v695_v45, %v694_v41  ;;  %v704_v2 = vrot.slane %v1770_v56, 6 }
  0x86   : > { %v452_v61 = vsel %vm328_vm2, %v451_v40, %v450_v50  ;;  %v698_v4 = vsel %vm325_vm1, %v697_v46, %v696_v0  ;;  %v706_v5 = vrot.slane %v1774_v58, 5  ;;  %v708_v6 = vrot.slane %v1776_v59, 4 }
  0x87   : > { %v453_v3 = vpack.c.b16 %v452_v61, %v445_v57  ;;  %v700_v7 = vsel %vm328_vm2, %v699_v53, %v698_v4  ;;  %v709_v8 = vrot.slane %v1778_v60, 3  ;;  %v711_v9 = vrot.slane %v1780_v62, 2 }
  0x88   : > { %v713_v10 = vrot.slane %v1782_v63, 1  ;;  %v701_v14 = vsel %vm331_vm3, %v1764_v52, %v700_v7  ;;  %v750_v15 = vrot.slane %v1750_v42, 6  ;;  %v751_v16 = vrot.slane %v1756_v47, 5 }
  0x89   : > { %454 = vrot.lane.b32.xlu1 %v453_v3, %s1486_s11  ;;  %v753_v23 = vrot.slane %v1758_v48, 4  ;;  %v703_v27 = vsel %vm334_vm4, %v702_v54, %v701_v14  ;;  %v710_v28 = vsel %vm322_vm0, %v709_v8, %v708_v6  ;;  %v755_v29 = vrot.slane %v1762_v51, 3 }
  0x8a   : > { %v757_v30 = vrot.slane %v1764_v52, 2  ;;  %v705_v31 = vsel %vm337_vm5, %v704_v2, %v703_v27  ;;  %v712_v32 = vsel %vm325_vm1, %v711_v9, %v710_v28  ;;  %v752_v33 = vsel %vm322_vm0, %v751_v16, %v750_v15 }
  0x8b   : > { %v759_v34 = vrot.slane %v1768_v55, 1  ;;  %v707_v35 = vsel %vm340_vm6, %v706_v5, %v705_v31  ;;  %v714_v36 = vsel %vm328_vm2, %v713_v10, %v712_v32  ;;  %v754_v37 = vsel %vm325_vm1, %v753_v23, %v752_v33 }
  0x8c   : > { %v762_v38 = vrot.slane %v1774_v58, 7  ;;  %v715_v39 = vpack.c.b16 %v714_v36, %v707_v35  ;;  %v756_v40 = vsel %vm328_vm2, %v755_v29, %v754_v37  ;;  %v764_v41 = vrot.slane %v1776_v59, 6 }
  0x8d   : > { %v765_v43 = vrot.slane %v1778_v60, 5  ;;  %v758_v44 = vsel %vm331_vm3, %v757_v30, %v756_v40  ;;  %v767_v45 = vrot.slane %v1780_v62, 4  ;;  %v769_v46 = vrot.slane %v1782_v63, 3 }
  0x8e   : > { %v459_v49 = vrot.slane %v1654_v11, 5  ;;  %716 = vrot.lane.b32.xlu0 %v715_v39, %s1487_s14  ;;  %v760_v50 = vsel %vm334_vm4, %v759_v34, %v758_v44  ;;  %v460_v54 = vrot.slane %v1656_v12, 4  ;;  %v462_v57 = vrot.slane %v1658_v13, 3 }
  0x8f   : > { %v766_v53 = vsel %vm322_vm0, %v765_v43, %v764_v41  ;;  %v761_v61 = vsel %vm337_vm5, %v1770_v56, %v760_v50  ;;  %v464_v2 = vrot.slane %v1663_v17, 2  ;;  %v466_v3 = vrot.slane %v1665_v18, 1 }
  0x90   : > { %v768_v0 = vsel %vm325_vm1, %v767_v45, %v766_v53  ;;  %v763_v11 = vsel %vm340_vm6, %v762_v38, %v761_v61  ;;  %v461_v5 = vsel %vm322_vm0, %v460_v54, %v459_v49  ;;  %v469_v6 = vrot.slane %v1669_v20, 7 }
  0x91   : > { %v770_v4 = vsel %vm328_vm2, %v769_v46, %v768_v0  ;;  %v463_v13 = vsel %vm325_vm1, %v462_v57, %v461_v5  ;;  %v471_v7 = vrot.slane %v1671_v21, 6  ;;  %v473_v8 = vrot.slane %v1673_v22, 5  ;;  %v1023_v5 = vld [vmem:[%s2161_s3] sm:$0xff] }
  0x92   : > { %v771_v12 = vpack.c.b16 %v770_v4, %v763_v11  ;;  %v465_v9 = vsel %vm328_vm2, %v464_v2, %v463_v13  ;;  %v474_v17 = vrot.slane %v1676_v24, 4  ;;  %v476_v18 = vrot.slane %v1678_v25, 3  ;;  %v1360_v2 = vld [vmem:[%s2159_s1 + $0x4] ss:$8 sps:$4 sm:$0x3f]  }
  0x93   : > { %v478_v10 = vrot.slane %v1680_v26, 2  ;;  %v467_v14 = vsel %vm331_vm3, %v466_v3, %v465_v9  ;;  %v777_v20 = vrot.slane %v1750_v42, 7  ;;  %v778_v15 = vrot.slane %v1756_v47, 6  ;;  %v908_v3 = vld [vmem:[%s2160_s2] sm:$0xff]  ;;  %v909_v11 = vld [vmem:[%s2160_s2 + $0x8] sm:$0xf] }
  0x94   : > { %772 = vrot.lane.b32.xlu1 %v771_v12, %s1488_s18  ;;  %v780_v21 = vrot.slane %v1758_v48, 5  ;;  %v468_v22 = vsel %vm334_vm4, %v1667_v19, %v467_v14  ;;  %v475_v16 = vsel %vm322_vm0, %v474_v17, %v473_v8  ;;  %v782_v24 = vrot.slane %v1762_v51, 4  ;;  %v1024_v4 = vld [vmem:[%s2161_s3 + $0x8] sm:$0xf] }
  0x95   : > { %v784_v25 = vrot.slane %v1764_v52, 3  ;;  %v470_v26 = vsel %vm337_vm5, %v469_v6, %v468_v22  ;;  %v477_v23 = vsel %vm325_vm1, %v476_v18, %v475_v16  ;;  %v779_v27 = vsel %vm322_vm0, %v778_v15, %v777_v20  ;;  %v1069_v6 = vld [vmem:[#allocation3] sm:$0x1] }
  0x96   : > { %v786_v42 = vrot.slane %v1768_v55, 2  ;;  %v472_v47 = vsel %vm340_vm6, %v471_v7, %v470_v26  ;;  %v479_v48 = vsel %vm328_vm2, %v478_v10, %v477_v23  ;;  %v781_v19 = vsel %vm325_vm1, %v780_v21, %v779_v27 }
  0x97   : > { %v788_v28 = vrot.slane %v1770_v56, 1  ;;  %v480_v29 = vpack.c.b16 %v479_v48, %v472_v47  ;;  %v783_v51 = vsel %vm328_vm2, %v782_v24, %v781_v19  ;;  %v791_v52 = vrot.slane %v1776_v59, 7 }
  0x98   : > { %v792_v30 = vrot.slane %v1778_v60, 6  ;;  %v785_v31 = vsel %vm331_vm3, %v784_v25, %v783_v51  ;;  %v794_v32 = vrot.slane %v1780_v62, 5  ;;  %v796_v55 = vrot.slane %v1782_v63, 4 }
  0x99   : > { %481 = vrot.lane.b32.xlu0 %v480_v29, %s1489_s19  ;;  %v787_v33 = vsel %vm334_vm4, %v786_v42, %v785_v31  ;;  %vm513_vm7 = vcmask 119808   ;;  %vm352_vm8 = vcmask 283800   ;;  %vm540_vm9 = vcmask 267400  }
  0x9a   : > { %v793_v56 = vsel %vm322_vm0, %v792_v30, %v791_v52  ;;  %v789_v34 = vsel %vm337_vm5, %v788_v28, %v787_v33  ;;  %vm614_vm10 = vcmask 415000   ;;  %vm378_vm11 = vcmask 431400  }
  0x9b   : > { %v795_v35 = vsel %vm325_vm1, %v794_v32, %v793_v56  ;;  %v790_v59 = vsel %vm340_vm6, %v1774_v58, %v789_v34  ;;  %vm640_vm12 = vcmask 562600   ;;  %vm404_vm13 = vcmask 579000  }
  0x9c   : > { %v797_v60 = vsel %vm328_vm2, %v796_v55, %v795_v35  ;;  %vm666_vm14 = vcmask 710200   ;;  %vm430_vm15 = vcmask 726600   ;;  %vm692_vm0 = vcmask 857800  }
  0x9d   : > { %v798_v36 = vpack.c.b16 %v797_v60, %v790_v59  ;;  %vm748_vm1 = vcmask 103424   ;;  %vm457_vm2 = vcmask 874200   ;;  %vm719_vm3 = vcmask 1005400  }
  0x9e   : > { %vm746_vm4 = vcmask 1046504   ;;  %vm775_vm5 = vcmask 251000   ;;  %vm484_vm6 = vcmask 1021800  }
  0x9f   : > { %799 = vrot.lane.b32.xlu1 %v798_v36, %s1490_s24 }
  0xbe   : > { %v509_v62 = vpop.permute.xlu0 %508 }
  0xbf   : > { %514 = vst.msk [vmem:[#allocation2 + $0x8] sm:$0x3f] %vm513_vm7, %v509_v62  ;;  %vm511_vm7 = vcmask 1046520  }
  0xc2   : > { %v350_v63 = vpop.permute.xlu1 %349 }
  0xc3   : > { %353 = vst.msk [vmem:[#allocation2] sm:$0x3f] %vm352_vm8, %v350_v63  ;;  %vm802_vm8 = vcmask 398600  }
  0xc8   : > { %v538_v37 = vpop.permute.xlu0 %537 }
  0xc9   : > { %541 = vst.msk [vmem:[#allocation2 + $0x8] sm:$0x3f] %vm540_vm9, %v538_v37  ;;  %vm929_vm9 = vcmask 130048  }
  0xca   : > { %1249 = vmatprep.mubr.msk.bf16.mxu1 %vm929_vm9, %v1360_v2  ;;  %1248 = vmatprep.mubr.msk.bf16.mxu0 %vm929_vm9, %v1360_v2 }
  0xd2   : > { %v612_v38 = vpop.permute.xlu1 %611 }
  0xd3   : > { %615 = vst.msk [vmem:[#allocation2 + $0x8] sm:$0x3f] %vm614_vm10, %v612_v38  ;;  %vm816_vm10 = vcmask 1039360  }
  0xd5   : > { %v376_v39 = vpop.permute.xlu0 %375 }
  0xd6   : > { %379 = vst.msk [vmem:[#allocation2] sm:$0x3f] %vm378_vm11, %v376_v39  ;;  %vm828_vm11 = vcmask 1031168  }
  0xdb   : > { %v638_v58 = vpop.permute.xlu1 %637 }
  0xdc   : > { %641 = vst.msk [vmem:[#allocation2 + $0x8] sm:$0x3f] %vm640_vm12, %v638_v58  ;;  %vm840_vm12 = vcmask 900096  }
  0xe0   : > { %v402_v40 = vpop.permute.xlu0 %401 }
  0xe1   : > { %405 = vst.msk [vmem:[#allocation2] sm:$0x3f] %vm404_vm13, %v402_v40  ;;  %vm852_vm13 = vcmask 891904  }
  0xe5   : > { %v664_v41 = vpop.permute.xlu1 %663 }
  0xe6   : > { %667 = vst.msk [vmem:[#allocation2 + $0x8] sm:$0x3f] %vm666_vm14, %v664_v41  ;;  %vm864_vm14 = vcmask 883712  }
  0xeb   : > { %v428_v43 = vpop.permute.xlu0 %427 }
  0xec   : > { %431 = vst.msk [vmem:[#allocation2] sm:$0x3f] %vm430_vm15, %v428_v43  ;;  %vm876_vm15 = vcmask 752640  }
  0xf0   : > { %v690_v44 = vpop.permute.xlu1 %689 }
  0xf1   : > { %693 = vst.msk [vmem:[#allocation2 + $0x8] sm:$0x3f] %vm692_vm0, %v690_v44  ;;  %vm888_vm0 = vcmask 744448  }
  0xf5   : > { %v744_v45 = vpop.permute.xlu0 %743 }
  0xf6   : > { %749 = vst.msk [vmem:[#allocation2 + $0x10] sm:$0x3f] %vm748_vm1, %v744_v45  ;;  %vm900_vm1 = vcmask 736256  }
  0xfb   : > { %v455_v46 = vpop.permute.xlu1 %454 }
  0xfc   : > { %458 = vst.msk [vmem:[#allocation2] sm:$0x3f] %vm457_vm2, %v455_v46  ;;  %vm1058_vm2 = vcmask 261120  }
 0x100   : > { %v717_v49 = vpop.permute.xlu0 %716 }
 0x101   : > { %720 = vst.msk [vmem:[#allocation2 + $0x8] sm:$0x3f] %vm719_vm3, %v717_v49  ;;  %vm1060_vm3 = vcmask 257024  }
 0x102   : > { %747 = vst.msk [vmem:[#allocation2 + $0x8] sm:$0x3f] %vm746_vm4, %v744_v45  ;;  %vm1041_vm4 = vcmask 1043456  }
 0x106   : > { %v773_v50 = vpop.permute.xlu1 %772 }
 0x107   : > { %776 = vst.msk [vmem:[#allocation2 + $0x10] sm:$0x3f] %vm775_vm5, %v773_v50 }
 0x109   : > { %v805_v53 = vld [vmem:[#allocation2 + $0x8] sm:$0xff] }
 0x10a   : > { %933 = vmatprep.subr.bf16.mxu0 %v805_v53 }
 0x10b   : > { %v482_v54 = vpop.permute.xlu0 %481 }
 0x10c   : > { %485 = vst.msk [vmem:[#allocation2] sm:$0x3f] %vm484_vm6, %v482_v54 }
 0x10d   : > { %512 = vst.msk [vmem:[#allocation2] sm:$0x3f] %vm511_vm7, %v509_v62  ;;  %v1358_v62 = vld [vmem:[%s2159_s1] ss:$8 sps:$4 sm:$0x3f]  }
 0x111   : > { %v800_v57 = vpop.permute.xlu1 %799 }
 0x112   : > { %803 = vst.msk [vmem:[#allocation2 + $0x10] sm:$0x3f] %vm802_vm8, %v800_v57 }
 0x114   : > { %v804_v61 = vld [vmem:[#allocation2] sm:$0xff] }
 0x115   : > { %934 = vmatpush1.bf16.msra.mxu0 %v804_v61 }
 0x119   : > { %v806_v0 = vld [vmem:[#allocation2 + $0x10] sm:$0xff] }
 0x11a   : > { %826 = vrot.lane.b32.xlu0 %v806_v0, %s1491_s12  ;;  %814 = vrot.lane.b32.xlu1 %v806_v0, %s1475_s29 }
 0x11b   : > { %977 = vmatpush1.bf16.msra.mxu1 %v806_v0 }
 0x11c   : > { %978 = vmatprep.subr.bf16.mxu1 %v1474_v1 }
 0x11e   : > { %850 = vrot.lane.b32.xlu0 %v806_v0, %s1489_s19  ;;  %838 = vrot.lane.b32.xlu1 %v806_v0, %s1492_s13 }
 0x122   : > { %822 = vrot.lane.b32.xlu1 %v804_v61, %s1491_s12  ;;  %810 = vrot.lane.b32.xlu0 %v804_v61, %s1475_s29 }
 0x126   : > { %846 = vrot.lane.b32.xlu1 %v804_v61, %s1489_s19  ;;  %834 = vrot.lane.b32.xlu0 %v804_v61, %s1492_s13 }
 0x12a   : > { %824 = vrot.lane.b32.xlu1 %v805_v53, %s1491_s12  ;;  %812 = vrot.lane.b32.xlu0 %v805_v53, %s1475_s29  ;;  %s1495_s29 = smov 90  }
 0x12e   : > { %862 = vrot.lane.b32.xlu1 %v806_v0, %s1493_s15  ;;  %858 = vrot.lane.b32.xlu0 %v804_v61, %s1493_s15 }
 0x132   : > { %848 = vrot.lane.b32.xlu1 %v805_v53, %s1489_s19  ;;  %836 = vrot.lane.b32.xlu0 %v805_v53, %s1492_s13  ;;  %s1259_s13 = smul.u32 3, %s1629_s17 }
 0x136   : > { %870 = vrot.lane.b32.xlu1 %v804_v61, %s1494_s16  ;;  %874 = vrot.lane.b32.xlu0 %v806_v0, %s1494_s16 }
 0x13a   : > { %872 = vrot.lane.b32.xlu1 %v805_v53, %s1494_s16  ;;  %860 = vrot.lane.b32.xlu0 %v805_v53, %s1493_s15  ;;  %s1260_s15 = smul.u32 48, %s1552_s4  ;;  %s244_s16 = scalar_lea.vmem [#allocation7], %s1259_s13 }
 0x13b   : > { %s1147_s26 = sshll.u32 %s244_s16, 4  ;;  %s1497_s4 = smov [#allocation7]   ;;  %s2116_s26 = int_to_ptr.vmem [resolvable:$true] %s1147_s26 }
 0x13c   : > { %s2114_s7 = scalar_lea.hbm %s2163_s5, %s1260_s15  ;;  %s1403_s9 = scalar_lea.vmem %s2116_s26, 48 }
 0x13d   : > { %p1404_p6 = scmp.ne.s32.totalorder %s2116_s26, %s1403_s9  ;;  %s1407_s10 = sshll.u32 %s1497_s4, 4  ;;  %s1408_s10 = int_to_ptr.vmem [resolvable:$false] %s1407_s10 }
 0x13e   : > { %886 = vrot.lane.b32.xlu1 %v806_v0, %s1486_s11  ;;  %882 = vrot.lane.b32.xlu0 %v804_v61, %s1486_s11  ;;  %s1409_s14 = scalar_lea.vmem %s1408_s10, 96  ;;  %p1410_p8 = scmp.lt.s32.totalorder %s2116_s26, %s1408_s10 }
 0x13f   : > { %p1405_p12 = pnand %p1404_p6, %p2169_p11  ;;  %p1411_p10 = scmp.lt.s32.totalorder %s1409_s14, %s1403_s9 }
 0x141   : > { %p1406_p13 = pneg %p1405_p12  ;;  %p1412_p0 = por %p1411_p10, %p1410_p8 }
 0x142   : > { %896 = vrot.lane.b32.xlu1 %v805_v53, %s1495_s29  ;;  %884 = vrot.lane.b32.xlu0 %v805_v53, %s1486_s11 }
 0x143   : > { %p1413_p2 = pnand %p1412_p0, %p1406_p13 }
 0x146   : > { %894 = vrot.lane.b32.xlu1 %v804_v61, %s1495_s29  ;;  %898 = vrot.lane.b32.xlu0 %v806_v0, %s1495_s29 }
 0x14a   : > { %912 = vperm.xlu1 %1333, %v908_v3   ;;  %917 = vperm.xlu0 %1332, %v909_v11  }
 0x14e   : > { %1032 = vperm.xlu1 %1333, %v1024_v4   ;;  %1027 = vperm.xlu0 %1332, %v1023_v5  }
 0x152   : > { %1072 = vperm.xlu1 %1333, %v1069_v6  }
 0x18c   : > { %v827_v12 = vpop.permute.xlu0 %826  ;;  %v815_v13 = vpop.permute.xlu1 %814 }
 0x18d   : > { %979 = vmatpush1.bf16.msra.mxu1 %v815_v13 }
 0x18e   : > { %980 = vmatprep.subr.bf16.mxu1 %v1474_v1 }
 0x190   : > { %v851_v7 = vpop.permute.xlu0 %850  ;;  %v839_v8 = vpop.permute.xlu1 %838 }
 0x191   : > { %981 = vmatpush1.bf16.msra.mxu1 %v827_v12 }
 0x192   : > { %982 = vmatprep.subr.bf16.mxu1 %v1474_v1 }
 0x194   : > { %v823_v9 = vpop.permute.xlu1 %822  ;;  %v811_v17 = vpop.permute.xlu0 %810 }
 0x195   : > { %983 = vmatpush1.bf16.msra.mxu1 %v839_v8 }
 0x196   : > { %984 = vmatprep.subr.bf16.mxu1 %v1474_v1 }
 0x198   : > { %v847_v18 = vpop.permute.xlu1 %846  ;;  %v835_v10 = vpop.permute.xlu0 %834 }
 0x199   : > { %985 = vmatpush1.bf16.msra.mxu1 %v851_v7 }
 0x19a   : > { %986 = vmatprep.subr.bf16.mxu1 %v1474_v1 }
 0x19c   : > { %v825_v14 = vpop.permute.xlu1 %824  ;;  %v813_v20 = vpop.permute.xlu0 %812 }
 0x19d   : > { %v818_v15 = vsel %vm816_vm10, %v813_v20, %v815_v13  ;;  %v817_v21 = vsel %vm816_vm10, %v811_v17, %v813_v20  ;;  %v830_v22 = vsel %vm828_vm11, %v825_v14, %v827_v12  ;;  %v829_v25 = vsel %vm828_vm11, %v823_v9, %v825_v14 }
 0x19e   : > { %935 = vmatprep.subr.bf16.mxu0 %v818_v15 }
 0x19f   : > { %936 = vmatpush1.bf16.msra.mxu0 %v817_v21 }
 0x1a0   : > { %v863_v16 = vpop.permute.xlu1 %862  ;;  %v859_v24 = vpop.permute.xlu0 %858  ;;  %937 = vmatprep.subr.bf16.mxu0 %v830_v22 }
 0x1a1   : > { %987 = vmatpush1.bf16.msra.mxu1 %v863_v16 }
 0x1a2   : > { %988 = vmatprep.subr.bf16.mxu1 %v1474_v1 }
 0x1a3   : > { %938 = vmatpush1.bf16.msra.mxu0 %v829_v25 }
 0x1a4   : > { %v849_v26 = vpop.permute.xlu1 %848  ;;  %v837_v23 = vpop.permute.xlu0 %836 }
 0x1a5   : > { %v842_v27 = vsel %vm840_vm12, %v837_v23, %v839_v8  ;;  %v841_v42 = vsel %vm840_vm12, %v835_v10, %v837_v23  ;;  %v854_v47 = vsel %vm852_vm13, %v849_v26, %v851_v7  ;;  %v853_v28 = vsel %vm852_vm13, %v847_v18, %v849_v26 }
 0x1a6   : > { %939 = vmatprep.subr.bf16.mxu0 %v842_v27  ;;  %v1075_v18 = vlaneseq }
 0x1a7   : > { %940 = vmatpush1.bf16.msra.mxu0 %v841_v42 }
 0x1a8   : > { %v871_v48 = vpop.permute.xlu1 %870  ;;  %v875_v19 = vpop.permute.xlu0 %874  ;;  %941 = vmatprep.subr.bf16.mxu0 %v854_v47  ;;  %v1076_v26 = vshrl.u32 %v1075_v18, 7  ;;  %vm1129_vm5 = vcmp.lt.s32.totalorder %v1075_v18, 288 }
 0x1a9   : > { %989 = vmatpush1.bf16.msra.mxu1 %v875_v19 }
 0x1aa   : > { %990 = vmatprep.subr.bf16.mxu1 %v1474_v1 }
 0x1ab   : > { %942 = vmatpush1.bf16.msra.mxu0 %v853_v28  ;;  %v1077_v28 = vsub.s32 0, %v1076_v26 }
 0x1ac   : > { %v873_v29 = vpop.permute.xlu1 %872  ;;  %v861_v51 = vpop.permute.xlu0 %860 }
 0x1ad   : > { %v866_v52 = vsel %vm864_vm14, %v861_v51, %v863_v16  ;;  %v865_v30 = vsel %vm864_vm14, %v859_v24, %v861_v51  ;;  %v878_v31 = vsel %vm876_vm15, %v873_v29, %v875_v19  ;;  %v877_v33 = vsel %vm876_vm15, %v871_v48, %v873_v29 }
 0x1ae   : > { %943 = vmatprep.subr.bf16.mxu0 %v866_v52 }
 0x1af   : > { %944 = vmatpush1.bf16.msra.mxu0 %v865_v30 }
 0x1b0   : > { %v887_v32 = vpop.permute.xlu1 %886  ;;  %v883_v55 = vpop.permute.xlu0 %882  ;;  %945 = vmatprep.subr.bf16.mxu0 %v878_v31 }
 0x1b1   : > { %991 = vmatpush1.bf16.msra.mxu1 %v887_v32 }
 0x1b2   : > { %992 = vmatprep.subr.bf16.mxu1 %v1474_v1 }
 0x1b3   : > { %946 = vmatpush1.bf16.msra.mxu0 %v877_v33 }
 0x1b4   : > { %v897_v56 = vpop.permute.xlu1 %896  ;;  %v885_v34 = vpop.permute.xlu0 %884 }
 0x1b5   : > { %v890_v35 = vsel %vm888_vm0, %v885_v34, %v887_v32  ;;  %v889_v59 = vsel %vm888_vm0, %v883_v55, %v885_v34 }
 0x1b6   : > { %947 = vmatprep.subr.bf16.mxu0 %v890_v35 }
 0x1b7   : > { %948 = vmatpush1.bf16.msra.mxu0 %v889_v59 }
 0x1b8   : > { %v895_v60 = vpop.permute.xlu1 %894  ;;  %v899_v36 = vpop.permute.xlu0 %898 }
 0x1b9   : > { %993 = vmatpush1.bf16.msra.mxu1 %v899_v36  ;;  %v902_v63 = vsel %vm900_vm1, %v897_v56, %v899_v36  ;;  %v901_v37 = vsel %vm900_vm1, %v895_v60, %v897_v56 }
 0x1ba   : > { %949 = vmatprep.subr.bf16.mxu0 %v902_v63 }
 0x1bb   : > { %950 = vmatpush1.bf16.msra.mxu0 %v901_v37 }
 0x1bc   : > { %1009 = vmatmul.mubr.bf16.vlgmr.msra.gmra.mrb[0].mxu1 %v1358_v62 }
 0x1be   : > { %966 = vmatmul.mubr.bf16.vlgmr.msra.gmra.mrb[0].mxu0 %v1358_v62 }
 0x1c9   : > { %v918_v1 = vpop.permute.xlu0 %917  ;;  %v913_v38 = vpop.permute.xlu1 %912 }
 0x1cd   : > { %v1028_v41 = vpop.permute.xlu0 %1027  ;;  %v1033_v11 = vpop.permute.xlu1 %1032 }
 0x1d1   : > { %v1073_v52 = vpop.permute.xlu1 %1072 }
 0x1d2   : > { %v1078_v33 = vrot.slane %v1073_v52, %v1077_v28 }
 0x28f   : > { %v1010_v39 = vpop.f32.mrb[0].mxu1 }
 0x290   : > { %v1011_v58 = vadd.f32 %v1010_v39, %v913_v38  ;;  %v1012_v40 = vpop.f32.mrb[1].mxu1 }
 0x291   : > { %v967_v43 = vpop.f32.mrb[0].mxu0  ;;  %v1013_v44 = vpop.f32.mrb[2].mxu1 }
 0x292   : > { %v1019_v45 = vmax.f32 %v1011_v58, 0.0  ;;  %v968_v46 = vadd.f32 %v967_v43, %v913_v38  ;;  %v1014_v49 = vadd.f32 %v1013_v44, %v918_v1  ;;  %v969_v50 = vpop.f32.mrb[1].mxu0  ;;  %v1015_v53 = vpop.f32.mrb[3].mxu1 }
 0x293   : > { %v970_v54 = vadd.f32 %v969_v50, %v913_v38  ;;  %v971_v57 = vpop.f32.mrb[2].mxu0 }
 0x294   : > { %v1022_v61 = vmax.f32 %v1014_v49, 0.0  ;;  %v972_v0 = vadd.f32 %v971_v57, %v918_v1  ;;  %v1037_v2 = vmul.f32 %v1028_v41, %v1019_v45  ;;  %v973_v3 = vpop.f32.mrb[3].mxu0  ;;  %v1017_v4 = vmax.f32 %v968_v46, 0.0 }
 0x295   : > { %v974_v5 = vadd.f32 %v973_v3, %v918_v1  ;;  %v1018_v12 = vmax.f32 %v970_v54, 0.0  ;;  %v1496_v45 = vmov 1966171168  }
 0x296   : > { %v1040_v6 = vmul.f32 %v1033_v11, %v1022_v61  ;;  %v1020_v13 = vmax.f32 %v972_v0, 0.0  ;;  %v1059_v7 = vsel %vm1058_vm2, %v1037_v2, 0.0  ;;  %v1035_v10 = vmul.f32 %v1028_v41, %v1017_v4 }
 0x297   : > { %v1021_v8 = vmax.f32 %v974_v5, 0.0  ;;  %v1036_v15 = vmul.f32 %v1028_v41, %v1018_v12  ;;  %v1105_v46 = vunpack.c.l.s4 %v1496_v45 }
 0x298   : > { %v1061_v9 = vsel %vm1060_vm3, %v1040_v6, 0.0  ;;  %v1038_v17 = vmul.f32 %v1033_v11, %v1020_v13 }
 0x299   : > { %v1062_v14 = vadd.f32 %v1061_v9, %v1059_v7  ;;  %v1039_v20 = vmul.f32 %v1033_v11, %v1021_v8  ;;  %v1106_v49 = vunpack.c.0.s8 %v1105_v46 }
 0x29a   : > { %v1042_v21 = vsel %vm1041_vm4, %v1038_v17, 0.0 }
 0x29b   : > { %v1043_v22 = vadd.f32 %v1042_v21, %v1035_v10  ;;  %v1063_v16 = vrot.slane %v1062_v14, 4  ;;  %v1050_v24 = vsel %vm1041_vm4, %v1039_v20, 0.0  ;;  %v1109_v54 = vsub.s32 %v1106_v49, %v1076_v26 }
 0x29c   : > { %v1051_v25 = vadd.f32 %v1050_v24, %v1036_v15 }
 0x29d   : > { %v1044_v23 = vrot.slane %v1043_v22, 4  ;;  %v1064_v27 = vadd.f32 %v1063_v16, %v1062_v14 }
 0x29e   : > { %v1052_v42 = vrot.slane %v1051_v25, 4 }
 0x29f   : > { %v1045_v47 = vadd.f32 %v1044_v23, %v1043_v22  ;;  %v1065_v48 = vrot.slane %v1064_v27, 2 }
 0x2a0   : > { %v1053_v19 = vadd.f32 %v1052_v42, %v1051_v25 }
 0x2a1   : > { %v1046_v29 = vrot.slane %v1045_v47, 2  ;;  %v1066_v51 = vadd.f32 %v1065_v48, %v1064_v27 }
 0x2a2   : > { %v1054_v30 = vrot.slane %v1053_v19, 2 }
 0x2a3   : > { %v1047_v31 = vadd.f32 %v1046_v29, %v1045_v47  ;;  %v1067_v32 = vrot.slane %v1066_v51, 1 }
 0x2a4   : > { %v1055_v55 = vadd.f32 %v1054_v30, %v1053_v19 }
 0x2a5   : > { %v1048_v56 = vrot.slane %v1047_v31, 1  ;;  %v1068_v34 = vadd.f32 %v1067_v32, %v1066_v51 }
 0x2a6   : > { %v1056_v35 = vrot.slane %v1055_v55, 1 }
 0x2a7   : > { %v1049_v59 = vadd.f32 %v1048_v56, %v1047_v31  ;;  %v1081_v60 = vadd.f32 %v1078_v33, %v1068_v34 }
 0x2a8   : > { %v1057_v36 = vadd.f32 %v1056_v35, %v1055_v55 }
 0x2a9   : > { %v1079_v62 = vadd.f32 %v1078_v33, %v1049_v59  ;;  %v1252_v63 = vmul.f32 -1.442695, %v1081_v60 }
 0x2aa   : > { %v1080_v37 = vadd.f32 %v1078_v33, %v1057_v36 }
 0x2ab   : > { %v1250_v1 = vmul.f32 -1.442695, %v1079_v62  ;;  %1361 = vpow2.f32 %v1252_v63 }
 0x2ac   : > { %v1251_v38 = vmul.f32 -1.442695, %v1080_v37 }
 0x2ad   : > { %1363 = vpow2.f32 %v1250_v1 }
 0x2ae   : > { %1365 = vpow2.f32 %v1251_v38 }
 0x2b5   : > { %v1362_v39 = vpop.eup %1361 }
 0x2b6   : > { %v1093_v58 = vadd.f32 1.0, %v1362_v39 }
 0x2b7   : > { %v1364_v40 = vpop.eup %1363 }
 0x2b8   : > { %v1366_v41 = vpop.eup %1365  ;;  %v1091_v43 = vadd.f32 1.0, %v1364_v40  ;;  %1367 = vrcp.f32 %v1093_v58 }
 0x2b9   : > { %v1092_v44 = vadd.f32 1.0, %v1366_v41 }
 0x2ba   : > { %1369 = vrcp.f32 %v1091_v43 }
 0x2bb   : > { %1371 = vrcp.f32 %v1092_v44 }
 0x2c2   : > { %v1368_v50 = vpop.eup %1367 }
 0x2c3   : > { %v1117_v2 = vrot.slane %v1368_v50, %v1109_v54 }
 0x2c4   : > { %v1370_v53 = vpop.eup %1369 }
 0x2c5   : > { %v1372_v57 = vpop.eup %1371 }
 0x2c6   : > { %v1103_v61 = vcombine.low %v1370_v53, %v1372_v57 }
 0x2c8   : > { %v1110_v0 = vrot.slane %v1103_v61, %v1109_v54 }
 0x2ca   : > { %v1118_v3 = vcombine.low %v1110_v0, %v1117_v2 }
 0x2cc   : > { %v1125_v11 = vrot.slane %v1118_v3, %v1109_v54 }
 0x2ce   : > { %1131 = vst.msk [vmem:[%s244_s16] sm:$0x7] %vm1129_vm5, %v1125_v11 }
 0x2cf   : > { %1416 = shalt.err (!%p1413_p2)
}
 0x2d0   : > { %s1417_s17 = scalar_lea.hbm %s2114_s7, 48  ;;  %s1421_s24 = scalar_lea.hbm %s2163_s5, 96 }
 0x2d1   : > { %p1418_p4 = scmp.ne.s32.totalorder %s2114_s7, %s1417_s17  ;;  %p1422_p9 = scmp.lt.u32.totalorder %s2114_s7, %s2163_s5 }
 0x2d2   : > { %p1423_p1 = scmp.lt.u32.totalorder %s1421_s24, %s1417_s17  ;;  %p1425_p6 = scmp.lt.u32.totalorder %s1417_s17, %s2114_s7 }
 0x2d3   : > { %p1419_p5 = pnand %p1418_p4, %p2169_p11 }
 0x2d4   : > { %p1424_p3 = por %p1423_p1, %p1422_p9 }
 0x2d5   : > { %p1420_p7 = pneg %p1419_p5 }
 0x2d6   : > { %p1426_p12 = por %p1425_p6, %p1424_p3 }
 0x2d8   : > { %p1427_p13 = pnand %p1426_p12, %p1420_p7 }
 0x2da   : > { %1430 = shalt.err (!%p1427_p13)
}
 0x2db   : > { %1263 = dma.vmem_to_hbm [thread:$0]  (%p2169_p11), %s2116_s26, 48, %s2114_s7, %s1133_s8  }
 0x2dc PF: > { %s1159_s13 = sand.u32 1, %s1457_s20   ;;  %p2170_p8 = scmp.ne.s32.totalorder %s2167_s6, 0 }
 0x2dd   : > { %p2171_p10 = scmp.ge.s32.totalorder %s1469_s23, 2  ;;  %s1160_s15 = scalar_lea.sflag [#allocation6], %s1159_s13 }
 0x2df   : > { %p1270_p0 = pnand %p2171_p10, %p2170_p8 }
 0x2e1   : > { %1452 = dma.done.wait (!%p1270_p0), %s1160_s15, 48  }
 0x2e2   : > { %1454 = vsyncadd (!%p1270_p0), %s1160_s15, 4294967248  ;;  %p20_p2 = scmp.ge.s32.totalorder %s1556_s25, 4   ;;  %s2172_s20 = smov %s1461_s21 }
 0x2e3   : > { %s2173_s21 = smov %s1465_s22  ;;  %s2174_s22 = smov %s1568_s28 }
 0x2e4   : > { %s2175_s23 = smov %s1556_s25  ;;  %22 = sbr.rel (!%p20_p2) target bundleno = 8 (0x8), region = 85 }
 0x2eb   :  { %1165 = vsyncpa [#allocation5], 1 }
 0x2ec   :  { %1167 = vsyncpa [#allocation5 + $0x1], 1 }
 0x2ed   :  { %1168 = vsyncpa [#allocation6], 1 }
 0x2ee   :  { %1170 = vsyncpa [#allocation6 + $0x1], 1 }

</bundles_post_ra>
